<compile_context>
chip_gen: v5e
topology: v5e:2x2
jax: 0.10.0
libtpu: 0.0.40
codegen_flags: <defaults>
</compile_context>

<pallas_src>
import functools

import jax
import jax.numpy as jnp
from jax.experimental import pallas as pl
from jax.experimental.pallas import tpu as pltpu

LEAKY_SLOPE = 0.2
IN_EPS = 1e-5  # nn.InstanceNorm2d default eps


# ----------------------------- glue helpers ---------------------------------

def _round_up(v, m):
    return (v + m - 1) // m * m


def nearest_resize(seg, H, W):
    """F.interpolate(mode='nearest') equivalent (index = floor(i*in/out))."""
    N, L, Hs, Ws = seg.shape
    rows = (jnp.arange(H) * Hs // H).astype(jnp.int32)
    cols = (jnp.arange(W) * Ws // W).astype(jnp.int32)
    return seg[:, :, rows[:, None], cols[None, :]]


def spectral_normalize(w, n_iter=50):
    # TODO(synk): torch.spectral_norm uses a 1-step power iteration with a persistent
    # random `u` buffer; here we use a deterministic converged power iteration.
    wm = w.reshape(w.shape[0], -1).astype(jnp.float32)
    v = jnp.ones((wm.shape[1],), jnp.float32) / jnp.sqrt(float(wm.shape[1]))
    for _ in range(n_iter):
        u = wm @ v
        u = u / (jnp.linalg.norm(u) + 1e-12)
        v = wm.T @ u
        v = v / (jnp.linalg.norm(v) + 1e-12)
    sigma = u @ (wm @ v)
    return (w / sigma).astype(jnp.float32)


def _fc_noise(mp, noise):
    # nn.Linear: noise @ W.T + b ; noise (N,L,2,D) -> (N,L,2,C)
    return jnp.einsum('nltd,cd->nltc', noise, mp['fc_w']) + mp['fc_b']


# ----------------------------- fused kernel ----------------------------------

def _inade_resblock_kernel(x_ref, seg_ref, mres_ref, m0_ref, m1_ref,
                           wres_ref, w0_ref, b0_ref, w1_ref, b1_ref,
                           out_ref, *, H, W, K, c_in, c_mid):
    HW = H * W
    p = K // 2
    slope2 = LEAKY_SLOPE * LEAKY_SLOPE  # F.leaky_relu(0.2) then nn.LeakyReLU(0.2)

    x = x_ref[0]        # (c_in, HW) f32
    seg = seg_ref[0]    # (L, HW)    f32
    col = jax.lax.broadcasted_iota(jnp.int32, (1, HW), 1) % W  # x-coordinate per lane

    def instance_norm(v):
        # InstanceNorm2d (affine=False, biased variance, eps=1e-5); full HW resident.
        mean = jnp.mean(v, axis=1, keepdims=True)
        vc = v - mean
        var = jnp.mean(vc * vc, axis=1, keepdims=True)
        return vc * jax.lax.rsqrt(var + IN_EPS)

    def modulate(stack, v_norm, c):
        # One stacked (6c, L) @ (L, HW) dot; gamma = Wg*NFg + Bg, beta = Wb*NFb + Bb.
        proj = jnp.dot(stack, seg, preferred_element_type=jnp.float32)
        gamma = proj[0:c] * proj[2 * c:3 * c] + proj[c:2 * c]
        beta = proj[3 * c:4 * c] * proj[5 * c:6 * c] + proj[4 * c:5 * c]
        return gamma * v_norm + beta

    def double_leaky(v):
        # two stacked LeakyReLU(0.2) == single select with slope 0.04 (sign-preserving)
        return jnp.where(v >= 0, v, slope2 * v)

    def shift_lanes(v, s, c):
        # out[:, i] = v[:, i + s] with zero fill outside [0, HW); s is static.
        if s == 0:
            return v
        if s > 0:
            return jnp.concatenate([v[:, s:], jnp.zeros((c, s), v.dtype)], axis=1)
        return jnp.concatenate([jnp.zeros((c, -s), v.dtype), v[:, :HW + s]], axis=1)

    def conv_same(act, w_mat_ref, b_col_ref, c):
        # 'same' KxK conv as ONE bf16 MXU dot over in-kernel shifted taps.
        taps = []
        for dy in range(K):
            for dx in range(K):
                t = shift_lanes(act, (dy - p) * W + (dx - p), c)
                if dx != p:
                    # mask columns that read across the left/right image border
                    valid = (col >= (p - dx)) & (col < (W + p - dx))
                    t = jnp.where(valid, t, 0.0)
                taps.append(t)
        tap_mat = jnp.concatenate(taps, axis=0).astype(jnp.bfloat16)  # (K*K*c, HW)
        acc = jnp.dot(w_mat_ref[...], tap_mat, preferred_element_type=jnp.float32)
        return acc + b_col_ref[...]   # (Cout, 1) bias broadcasts over lanes

    x_norm = instance_norm(x)

    # Residual branch: modulation -> 1x1 conv (no bias, no activation).
    a_res = modulate(mres_ref[0], x_norm, c_in)
    x_res = jnp.dot(wres_ref[...], a_res.astype(jnp.bfloat16),
                    preferred_element_type=jnp.float32)

    # Main branch, stage 0: modulation -> double LeakyReLU -> 3x3 conv.
    a0 = double_leaky(modulate(m0_ref[0], x_norm, c_in))
    h0 = conv_same(a0, w0_ref, b0_ref, c_in)          # (c_mid, HW)

    # Main branch, stage 1: re-normalize conv_0 output, modulate, act, conv, add res.
    a1 = double_leaky(modulate(m1_ref[0], instance_norm(h0), c_mid))
    h1 = conv_same(a1, w1_ref, b1_ref, c_mid)         # (c_out, HW)

    out_ref[0] = x_res + h1


# ------------------------------ INADEResBlock --------------------------------

def inade_resblock_forward(params, x, seg, noise):
    """Matches INADEResBlock.forward (resnet_connection=True since Cin != Cout)."""
    N, Cin, H, W = x.shape
    Cmid, _, K, _ = params['w0'].shape
    Cout = params['w1'].shape[0]
    L = seg.shape[1]
    HW = H * W

    Cin_p = _round_up(Cin, 8)
    Cmid_p = _round_up(Cmid, 8)
    Cout_p = _round_up(Cout, 8)

    # ---- host-side layout glue (no feature-map duplication, no im2col) ----
    seg_r = nearest_resize(seg, H, W).reshape(N, L, HW).astype(jnp.float32)
    x_flat = jnp.pad(x.reshape(N, Cin, HW).astype(jnp.float32),
                     ((0, 0), (0, Cin_p - Cin), (0, 0)))

    def mod_stack(mp, C, C_p):
        # Stack [Wg; Bg; NFg; Wb; Bb; NFb] -> (N, 6*C_p, L). Padded rows are zero,
        # so padded channels get gamma=beta=0 and stay exactly zero downstream.
        nf = _fc_noise(mp, noise)                                     # (N, L, 2, C)

        def shared(m):                                                # (L, C) -> (N, C_p, L)
            mt = jnp.pad(jnp.transpose(m), ((0, C_p - C), (0, 0)))
            return jnp.broadcast_to(mt[None], (N, C_p, L))

        def per_sample(m):                                            # (N, L, C) -> (N, C_p, L)
            return jnp.pad(jnp.transpose(m, (0, 2, 1)),
                           ((0, 0), (0, C_p - C), (0, 0)))

        return jnp.concatenate(
            [shared(mp['weight'][..., 0]), shared(mp['bias'][..., 0]),
             per_sample(nf[:, :, 0, :]),
             shared(mp['weight'][..., 1]), shared(mp['bias'][..., 1]),
             per_sample(nf[:, :, 1, :])], axis=1).astype(jnp.float32)

    mres = mod_stack(params['mod_res'], Cin, Cin_p)
    m0 = mod_stack(params['mod_0'], Cin, Cin_p)
    m1 = mod_stack(params['mod_1'], Cmid, Cmid_p)

    def conv_mat(w, ci, ci_p, co, co_p):
        # (Cout, Cin, K, K) -> (Cout_p, K*K*Cin_p) bf16, tap-major / cin-minor.
        kk = w.shape[2]
        wt = jnp.transpose(w.astype(jnp.float32), (0, 2, 3, 1))       # (co, K, K, ci)
        wt = jnp.pad(wt, ((0, co_p - co), (0, 0), (0, 0), (0, ci_p - ci)))
        return wt.reshape(co_p, kk * kk * ci_p).astype(jnp.bfloat16)

    w_res_m = conv_mat(params['w_res'], Cin, Cin_p, Cout, Cout_p)     # 1x1 -> (Cout_p, Cin_p)
    w0_m = conv_mat(params['w0'], Cin, Cin_p, Cmid, Cmid_p)
    w1_m = conv_mat(params['w1'], Cmid, Cmid_p, Cout, Cout_p)
    b0_c = jnp.pad(params['b0'].astype(jnp.float32), (0, Cmid_p - Cmid)).reshape(Cmid_p, 1)
    b1_c = jnp.pad(params['b1'].astype(jnp.float32), (0, Cout_p - Cout)).reshape(Cout_p, 1)

    kk = K * K
    flops = 2 * N * HW * (Cmid_p * kk * Cin_p + Cout_p * kk * Cmid_p
                          + Cout_p * Cin_p + 6 * L * (2 * Cin_p + Cmid_p))
    bytes_accessed = 4 * (x_flat.size + seg_r.size + mres.size + m0.size + m1.size
                          + b0_c.size + b1_c.size + N * Cout_p * HW) \
                     + 2 * (w_res_m.size + w0_m.size + w1_m.size)

    kernel = functools.partial(_inade_resblock_kernel, H=H, W=W, K=K,
                               c_in=Cin_p, c_mid=Cmid_p)

    out = pl.pallas_call(
        kernel,
        out_shape=jax.ShapeDtypeStruct((N, Cout_p, HW), jnp.float32),
        grid=(N,),
        in_specs=[
            pl.BlockSpec((1, Cin_p, HW), lambda n: (n, 0, 0)),          # x
            pl.BlockSpec((1, L, HW), lambda n: (n, 0, 0)),              # seg
            pl.BlockSpec((1, 6 * Cin_p, L), lambda n: (n, 0, 0)),       # mod_res stack
            pl.BlockSpec((1, 6 * Cin_p, L), lambda n: (n, 0, 0)),       # mod_0 stack
            pl.BlockSpec((1, 6 * Cmid_p, L), lambda n: (n, 0, 0)),      # mod_1 stack
            pl.BlockSpec((Cout_p, Cin_p), lambda n: (0, 0)),            # w_res (bf16)
            pl.BlockSpec((Cmid_p, kk * Cin_p), lambda n: (0, 0)),       # w0 (bf16)
            pl.BlockSpec((Cmid_p, 1), lambda n: (0, 0)),                # b0
            pl.BlockSpec((Cout_p, kk * Cmid_p), lambda n: (0, 0)),      # w1 (bf16)
            pl.BlockSpec((Cout_p, 1), lambda n: (0, 0)),                # b1
        ],
        out_specs=pl.BlockSpec((1, Cout_p, HW), lambda n: (n, 0, 0)),
        compiler_params=pltpu.CompilerParams(dimension_semantics=("parallel",)),
        cost_estimate=pl.CostEstimate(flops=int(flops),
                                      transcendentals=int(N * (Cin_p + Cmid_p)),
                                      bytes_accessed=int(bytes_accessed)),
    )(x_flat, seg_r, mres, m0, m1, w_res_m, w0_m, b0_c, w1_m, b1_c)

    return out[:, :Cout, :].reshape(N, Cout, H, W)


# ------------------------------ reference (pure JAX) --------------------------

def reference_forward(params, x, seg, noise):
    def leaky(v):
        return jnp.where(v > 0, v, LEAKY_SLOPE * v)

    def instance_norm(v):
        mean = v.mean(axis=(2, 3), keepdims=True)
        var = ((v - mean) ** 2).mean(axis=(2, 3), keepdims=True)
        return (v - mean) / jnp.sqrt(var + IN_EPS)

    def modulation(mp, v):
        H, W = v.shape[2:]
        segr = nearest_resize(seg, H, W)
        vn = instance_norm(v)
        nf = _fc_noise(mp, noise)
        w, b = mp['weight'], mp['bias']

        def gb(idx):
            cw = jnp.einsum('ic,nihw->nchw', w[..., idx], segr)
            cb = jnp.einsum('ic,nihw->nchw', b[..., idx], segr)
            inn = jnp.einsum('nic,nihw->nchw', nf[:, :, idx, :], segr)
            return cw * inn + cb

        return gb(0) * vn + gb(1)

    def conv(v, w, bias):
        p = w.shape[2] // 2
        out = jax.lax.conv_general_dilated(
            v, w, window_strides=(1, 1), padding=[(p, p), (p, p)],
            dimension_numbers=('NCHW', 'OIHW', 'NCHW'))
        if bias is not None:
            out = out + bias.reshape(1, -1, 1, 1)
        return out

    x_res = modulation(params['mod_res'], x)
    x_res = conv(x_res, params['w_res'], None)
    dx = leaky(modulation(params['mod_0'], x))
    dx = conv(leaky(dx), params['w0'], params['b0'])
    dx = leaky(modulation(params['mod_1'], dx))
    dx = conv(leaky(dx), params['w1'], params['b1'])
    return x_res + dx


# ------------------------------- init & main ----------------------------------

def init_params(key, input_dim, output_dim, num_labels, kernel_size, noise_dim):
    mid = min(input_dim, output_dim)
    kw0, kb0, kw1, kb1, kwr, km0, km1, kmr = jax.random.split(key, 8)

    def mod_params(k, C):
        k1, k2, k3 = jax.random.split(k, 3)
        bound = 1.0 / jnp.sqrt(float(noise_dim))
        return dict(
            weight=jax.random.uniform(k1, (num_labels, C, 2), jnp.float32),  # uniform_
            bias=jnp.zeros((num_labels, C, 2), jnp.float32),                 # zeros_
            fc_w=jax.random.uniform(k2, (C, noise_dim), jnp.float32, -bound, bound),
            fc_b=jax.random.uniform(k3, (C,), jnp.float32, -bound, bound),
        )

    def conv_w(k, co, ci, kk):
        bound = 1.0 / jnp.sqrt(float(ci * kk * kk))
        return jax.random.uniform(k, (co, ci, kk, kk), jnp.float32, -bound, bound)

    return dict(
        mod_0=mod_params(km0, input_dim),
        mod_1=mod_params(km1, mid),
        mod_res=mod_params(kmr, input_dim),
        w0=spectral_normalize(conv_w(kw0, mid, input_dim, kernel_size)),
        b0=jax.random.uniform(kb0, (mid,), jnp.float32, -0.1, 0.1),
        w1=spectral_normalize(conv_w(kw1, output_dim, mid, kernel_size)),
        b1=jax.random.uniform(kb1, (output_dim,), jnp.float32, -0.1, 0.1),
        w_res=spectral_normalize(conv_w(kwr, output_dim, input_dim, 1)),
    )


if __name__ == "__main__":
    N, Cin, Cout, L, K, D = 2, 4, 8, 3, 3, 16   # Cin != Cout -> resnet_connection path
    H = W = 16
    Hs = Ws = 32                                # seg map resized (nearest) to 16x16

    key = jax.random.PRNGKey(0)
    kx, ks, kn, kp = jax.random.split(key, 4)
    x = jax.random.normal(kx, (N, Cin, H, W), jnp.float32)
    seg = jax.random.uniform(ks, (N, L, Hs, Ws), jnp.float32)
    noise = jax.random.normal(kn, (N, L, 2, D), jnp.float32)
    params = init_params(kp, Cin, Cout, L, K, D)

    out = inade_resblock_forward(params, x, seg, noise)
    out = jax.block_until_ready(out)

    assert out.shape == (N, Cout, H, W)
    assert bool(jnp.all(jnp.isfinite(out)))

    ref = reference_forward(params, x, seg, noise)
    rel_err = float(jnp.max(jnp.abs(out - ref)) / (jnp.max(jnp.abs(ref)) + 1e-6))
    assert rel_err < 5e-2, f"mismatch vs reference: {rel_err}"

    print("KERNEL_OK")
</pallas_src>

<mosaic_0001>
module attributes {stable_mosaic.version = 11 : i64} {
  func.func @_inade_resblock_kernel(%arg0: i32, %arg1: memref<1x8x256xf32, #tpu.memory_space<vmem>>, %arg2: memref<1x3x256xf32, #tpu.memory_space<vmem>>, %arg3: memref<1x48x3xf32, #tpu.memory_space<vmem>>, %arg4: memref<1x48x3xf32, #tpu.memory_space<vmem>>, %arg5: memref<1x48x3xf32, #tpu.memory_space<vmem>>, %arg6: memref<8x8xbf16, #tpu.memory_space<vmem>>, %arg7: memref<8x72xbf16, #tpu.memory_space<vmem>>, %arg8: memref<8x1xf32, #tpu.memory_space<vmem>>, %arg9: memref<8x72xbf16, #tpu.memory_space<vmem>>, %arg10: memref<8x1xf32, #tpu.memory_space<vmem>>, %arg11: memref<1x8x256xf32, #tpu.memory_space<vmem>>) attributes {dimension_semantics = [#tpu.dimension_semantics<parallel>], iteration_bounds = array<i64: 2>, scalar_prefetch = 0 : i64, scratch_operands = 0 : i64, tpu.core_type = #tpu.core_type<tc>, window_params = [{transform_indices = @transform_0, window_bounds = array<i64: 1, 8, 256>}, {transform_indices = @transform_1, window_bounds = array<i64: 1, 3, 256>}, {transform_indices = @transform_2, window_bounds = array<i64: 1, 48, 3>}, {transform_indices = @transform_3, window_bounds = array<i64: 1, 48, 3>}, {transform_indices = @transform_4, window_bounds = array<i64: 1, 48, 3>}, {pipeline_mode = #tpu.pipeline_mode<synchronous>, transform_indices = @transform_5, window_bounds = array<i64: 8, 8>}, {pipeline_mode = #tpu.pipeline_mode<synchronous>, transform_indices = @transform_6, window_bounds = array<i64: 8, 72>}, {pipeline_mode = #tpu.pipeline_mode<synchronous>, transform_indices = @transform_7, window_bounds = array<i64: 8, 1>}, {pipeline_mode = #tpu.pipeline_mode<synchronous>, transform_indices = @transform_8, window_bounds = array<i64: 8, 72>}, {pipeline_mode = #tpu.pipeline_mode<synchronous>, transform_indices = @transform_9, window_bounds = array<i64: 8, 1>}, {transform_indices = @transform_10, window_bounds = array<i64: 1, 8, 256>}]} {
    %c0 = arith.constant 0 : index
    %c0_0 = arith.constant 0 : index
    %c0_1 = arith.constant 0 : index
    %0 = vector.load %arg1[%c0, %c0_0, %c0_1] : memref<1x8x256xf32, #tpu.memory_space<vmem>>, vector<1x8x256xf32>
    %1 = vector.shape_cast %0 : vector<1x8x256xf32> to vector<8x256xf32>
    %c0_2 = arith.constant 0 : index
    %c0_3 = arith.constant 0 : index
    %c0_4 = arith.constant 0 : index
    %2 = vector.load %arg2[%c0_2, %c0_3, %c0_4] : memref<1x3x256xf32, #tpu.memory_space<vmem>>, vector<1x3x256xf32>
    %3 = vector.shape_cast %2 : vector<1x3x256xf32> to vector<3x256xf32>
    %4 = tpu.iota {dimensions = array<i32: 1>} : vector<1x256xi32>
    %c16_i32 = arith.constant 16 : i32
    %c0_i32 = arith.constant 0 : i32
    %5 = arith.cmpi eq, %c16_i32, %c0_i32 : i32
    %c1_i32 = arith.constant 1 : i32
    %6 = arith.select %5, %c1_i32, %c16_i32 : i32
    %7 = vector.broadcast %6 : i32 to vector<1x256xi32>
    %8 = arith.remsi %4, %7 : vector<1x256xi32>
    %c0_i32_5 = arith.constant 0 : i32
    %9 = vector.broadcast %c0_i32_5 : i32 to vector<1x256xi32>
    %10 = arith.cmpi ne, %8, %9 : vector<1x256xi32>
    %c0_i32_6 = arith.constant 0 : i32
    %11 = vector.broadcast %c0_i32_6 : i32 to vector<1x256xi32>
    %12 = arith.cmpi slt, %8, %11 : vector<1x256xi32>
    %c0_i32_7 = arith.constant 0 : i32
    %13 = arith.cmpi slt, %6, %c0_i32_7 : i32
    %14 = vector.broadcast %13 : i1 to vector<1x256xi1>
    %15 = vector.broadcast %14 : vector<1x256xi1> to vector<1x256xi1>
    %16 = arith.xori %12, %15 : vector<1x256xi1>
    %17 = arith.andi %16, %10 : vector<1x256xi1>
    %18 = vector.broadcast %6 : i32 to vector<1x256xi32>
    %19 = arith.addi %8, %18 : vector<1x256xi32>
    %20 = arith.select %17, %19, %8 : vector<1x256xi1>, vector<1x256xi32>
    %cst = arith.constant dense<0.000000e+00> : vector<8xf32>
    %21 = vector.multi_reduction <add>, %1, %cst [1] : vector<8x256xf32> to vector<8xf32>
    %22 = vector.shape_cast %21 : vector<8xf32> to vector<8x1xf32>
    %cst_8 = arith.constant 2.560000e+02 : f32
    %23 = vector.broadcast %cst_8 : f32 to vector<8x1xf32>
    %24 = arith.divf %22, %23 : vector<8x1xf32>
    %25 = vector.broadcast %24 : vector<8x1xf32> to vector<8x256xf32>
    %26 = arith.subf %1, %25 : vector<8x256xf32>
    %27 = arith.mulf %26, %26 : vector<8x256xf32>
    %cst_9 = arith.constant dense<0.000000e+00> : vector<8xf32>
    %28 = vector.multi_reduction <add>, %27, %cst_9 [1] : vector<8x256xf32> to vector<8xf32>
    %29 = vector.shape_cast %28 : vector<8xf32> to vector<8x1xf32>
    %cst_10 = arith.constant 2.560000e+02 : f32
    %30 = vector.broadcast %cst_10 : f32 to vector<8x1xf32>
    %31 = arith.divf %29, %30 : vector<8x1xf32>
    %cst_11 = arith.constant 9.99999974E-6 : f32
    %32 = vector.broadcast %cst_11 : f32 to vector<8x1xf32>
    %33 = arith.addf %31, %32 : vector<8x1xf32>
    %34 = math.rsqrt %33 : vector<8x1xf32>
    %35 = vector.broadcast %34 : vector<8x1xf32> to vector<8x256xf32>
    %36 = arith.mulf %26, %35 : vector<8x256xf32>
    %c0_12 = arith.constant 0 : index
    %c0_13 = arith.constant 0 : index
    %c0_14 = arith.constant 0 : index
    %37 = vector.load %arg3[%c0_12, %c0_13, %c0_14] : memref<1x48x3xf32, #tpu.memory_space<vmem>>, vector<1x48x3xf32>
    %38 = vector.shape_cast %37 : vector<1x48x3xf32> to vector<48x3xf32>
    %cst_15 = arith.constant dense<0.000000e+00> : vector<48x256xf32>
    %39 = tpu.matmul %38, %3, %cst_15 {dimension_numbers = #tpu.dot_dimension_numbers<[1], [0], [0], [1], [0, 0, 1, 1], [], []>} : vector<48x3xf32>, vector<3x256xf32>, vector<48x256xf32> -> vector<48x256xf32>
    %40 = vector.extract_strided_slice %39 {offsets = [0, 0], sizes = [8, 256], strides = [1, 1]} : vector<48x256xf32> to vector<8x256xf32>
    %41 = vector.extract_strided_slice %39 {offsets = [16, 0], sizes = [8, 256], strides = [1, 1]} : vector<48x256xf32> to vector<8x256xf32>
    %42 = arith.mulf %40, %41 : vector<8x256xf32>
    %43 = vector.extract_strided_slice %39 {offsets = [8, 0], sizes = [8, 256], strides = [1, 1]} : vector<48x256xf32> to vector<8x256xf32>
    %44 = arith.addf %42, %43 : vector<8x256xf32>
    %45 = vector.extract_strided_slice %39 {offsets = [24, 0], sizes = [8, 256], strides = [1, 1]} : vector<48x256xf32> to vector<8x256xf32>
    %46 = vector.extract_strided_slice %39 {offsets = [40, 0], sizes = [8, 256], strides = [1, 1]} : vector<48x256xf32> to vector<8x256xf32>
    %47 = arith.mulf %45, %46 : vector<8x256xf32>
    %48 = vector.extract_strided_slice %39 {offsets = [32, 0], sizes = [8, 256], strides = [1, 1]} : vector<48x256xf32> to vector<8x256xf32>
    %49 = arith.addf %47, %48 : vector<8x256xf32>
    %50 = arith.mulf %44, %36 : vector<8x256xf32>
    %51 = arith.addf %50, %49 : vector<8x256xf32>
    %c0_16 = arith.constant 0 : index
    %c0_17 = arith.constant 0 : index
    %52 = vector.load %arg6[%c0_16, %c0_17] : memref<8x8xbf16, #tpu.memory_space<vmem>>, vector<8x8xbf16>
    %53 = arith.truncf %51 : vector<8x256xf32> to vector<8x256xbf16>
    %cst_18 = arith.constant dense<0.000000e+00> : vector<8x256xf32>
    %54 = tpu.matmul %52, %53, %cst_18 {dimension_numbers = #tpu.dot_dimension_numbers<[1], [0], [0], [1], [0, 0, 1, 1], [], []>} : vector<8x8xbf16>, vector<8x256xbf16>, vector<8x256xf32> -> vector<8x256xf32>
    %c0_19 = arith.constant 0 : index
    %c0_20 = arith.constant 0 : index
    %c0_21 = arith.constant 0 : index
    %55 = vector.load %arg4[%c0_19, %c0_20, %c0_21] : memref<1x48x3xf32, #tpu.memory_space<vmem>>, vector<1x48x3xf32>
    %56 = vector.shape_cast %55 : vector<1x48x3xf32> to vector<48x3xf32>
    %cst_22 = arith.constant dense<0.000000e+00> : vector<48x256xf32>
    %57 = tpu.matmul %56, %3, %cst_22 {dimension_numbers = #tpu.dot_dimension_numbers<[1], [0], [0], [1], [0, 0, 1, 1], [], []>} : vector<48x3xf32>, vector<3x256xf32>, vector<48x256xf32> -> vector<48x256xf32>
    %58 = vector.extract_strided_slice %57 {offsets = [0, 0], sizes = [8, 256], strides = [1, 1]} : vector<48x256xf32> to vector<8x256xf32>
    %59 = vector.extract_strided_slice %57 {offsets = [16, 0], sizes = [8, 256], strides = [1, 1]} : vector<48x256xf32> to vector<8x256xf32>
    %60 = arith.mulf %58, %59 : vector<8x256xf32>
    %61 = vector.extract_strided_slice %57 {offsets = [8, 0], sizes = [8, 256], strides = [1, 1]} : vector<48x256xf32> to vector<8x256xf32>
    %62 = arith.addf %60, %61 : vector<8x256xf32>
    %63 = vector.extract_strided_slice %57 {offsets = [24, 0], sizes = [8, 256], strides = [1, 1]} : vector<48x256xf32> to vector<8x256xf32>
    %64 = vector.extract_strided_slice %57 {offsets = [40, 0], sizes = [8, 256], strides = [1, 1]} : vector<48x256xf32> to vector<8x256xf32>
    %65 = arith.mulf %63, %64 : vector<8x256xf32>
    %66 = vector.extract_strided_slice %57 {offsets = [32, 0], sizes = [8, 256], strides = [1, 1]} : vector<48x256xf32> to vector<8x256xf32>
    %67 = arith.addf %65, %66 : vector<8x256xf32>
    %68 = arith.mulf %62, %36 : vector<8x256xf32>
    %69 = arith.addf %68, %67 : vector<8x256xf32>
    %cst_23 = arith.constant 0.000000e+00 : f32
    %70 = vector.broadcast %cst_23 : f32 to vector<8x256xf32>
    %71 = arith.cmpf oge, %69, %70 : vector<8x256xf32>
    %cst_24 = arith.constant 4.000000e-02 : f32
    %72 = vector.broadcast %cst_24 : f32 to vector<8x256xf32>
    %73 = arith.mulf %72, %69 : vector<8x256xf32>
    %74 = arith.select %71, %69, %73 : vector<8x256xi1>, vector<8x256xf32>
    %cst_25 = arith.constant 0.000000e+00 : f32
    %75 = vector.broadcast %cst_25 : f32 to vector<8x17xf32>
    %76 = vector.extract_strided_slice %74 {offsets = [0, 0], sizes = [8, 239], strides = [1, 1]} : vector<8x256xf32> to vector<8x239xf32>
    %77 = tpu.concatenate %75, %76 in 1 : vector<8x17xf32>, vector<8x239xf32> -> vector<8x256xf32>
    %c1_i32_26 = arith.constant 1 : i32
    %78 = vector.broadcast %c1_i32_26 : i32 to vector<1x256xi32>
    %79 = arith.cmpi sge, %20, %78 : vector<1x256xi32>
    %c17_i32 = arith.constant 17 : i32
    %80 = vector.broadcast %c17_i32 : i32 to vector<1x256xi32>
    %81 = arith.cmpi slt, %20, %80 : vector<1x256xi32>
    %82 = arith.andi %79, %81 : vector<1x256xi1>
    %cst_27 = arith.constant 0.000000e+00 : f32
    %83 = vector.shape_cast %82 : vector<1x256xi1> to vector<1x256xi1>
    %84 = vector.broadcast %83 : vector<1x256xi1> to vector<8x256xi1>
    %85 = vector.broadcast %cst_27 : f32 to vector<8x256xf32>
    %86 = arith.select %84, %77, %85 : vector<8x256xi1>, vector<8x256xf32>
    %cst_28 = arith.constant 0.000000e+00 : f32
    %87 = vector.broadcast %cst_28 : f32 to vector<8x16xf32>
    %88 = vector.extract_strided_slice %74 {offsets = [0, 0], sizes = [8, 240], strides = [1, 1]} : vector<8x256xf32> to vector<8x240xf32>
    %89 = tpu.concatenate %87, %88 in 1 : vector<8x16xf32>, vector<8x240xf32> -> vector<8x256xf32>
    %cst_29 = arith.constant 0.000000e+00 : f32
    %90 = vector.broadcast %cst_29 : f32 to vector<8x15xf32>
    %91 = vector.extract_strided_slice %74 {offsets = [0, 0], sizes = [8, 241], strides = [1, 1]} : vector<8x256xf32> to vector<8x241xf32>
    %92 = tpu.concatenate %90, %91 in 1 : vector<8x15xf32>, vector<8x241xf32> -> vector<8x256xf32>
    %c-1_i32 = arith.constant -1 : i32
    %93 = vector.broadcast %c-1_i32 : i32 to vector<1x256xi32>
    %94 = arith.cmpi sge, %20, %93 : vector<1x256xi32>
    %c15_i32 = arith.constant 15 : i32
    %95 = vector.broadcast %c15_i32 : i32 to vector<1x256xi32>
    %96 = arith.cmpi slt, %20, %95 : vector<1x256xi32>
    %97 = arith.andi %94, %96 : vector<1x256xi1>
    %cst_30 = arith.constant 0.000000e+00 : f32
    %98 = vector.shape_cast %97 : vector<1x256xi1> to vector<1x256xi1>
    %99 = vector.broadcast %98 : vector<1x256xi1> to vector<8x256xi1>
    %100 = vector.broadcast %cst_30 : f32 to vector<8x256xf32>
    %101 = arith.select %99, %92, %100 : vector<8x256xi1>, vector<8x256xf32>
    %cst_31 = arith.constant 0.000000e+00 : f32
    %102 = vector.broadcast %cst_31 : f32 to vector<8x1xf32>
    %103 = vector.extract_strided_slice %74 {offsets = [0, 0], sizes = [8, 255], strides = [1, 1]} : vector<8x256xf32> to vector<8x255xf32>
    %104 = tpu.concatenate %102, %103 in 1 : vector<8x1xf32>, vector<8x255xf32> -> vector<8x256xf32>
    %c1_i32_32 = arith.constant 1 : i32
    %105 = vector.broadcast %c1_i32_32 : i32 to vector<1x256xi32>
    %106 = arith.cmpi sge, %20, %105 : vector<1x256xi32>
    %c17_i32_33 = arith.constant 17 : i32
    %107 = vector.broadcast %c17_i32_33 : i32 to vector<1x256xi32>
    %108 = arith.cmpi slt, %20, %107 : vector<1x256xi32>
    %109 = arith.andi %106, %108 : vector<1x256xi1>
    %cst_34 = arith.constant 0.000000e+00 : f32
    %110 = vector.shape_cast %109 : vector<1x256xi1> to vector<1x256xi1>
    %111 = vector.broadcast %110 : vector<1x256xi1> to vector<8x256xi1>
    %112 = vector.broadcast %cst_34 : f32 to vector<8x256xf32>
    %113 = arith.select %111, %104, %112 : vector<8x256xi1>, vector<8x256xf32>
    %114 = vector.extract_strided_slice %74 {offsets = [0, 1], sizes = [8, 255], strides = [1, 1]} : vector<8x256xf32> to vector<8x255xf32>
    %cst_35 = arith.constant 0.000000e+00 : f32
    %115 = vector.broadcast %cst_35 : f32 to vector<8x1xf32>
    %116 = tpu.concatenate %114, %115 in 1 : vector<8x255xf32>, vector<8x1xf32> -> vector<8x256xf32>
    %c-1_i32_36 = arith.constant -1 : i32
    %117 = vector.broadcast %c-1_i32_36 : i32 to vector<1x256xi32>
    %118 = arith.cmpi sge, %20, %117 : vector<1x256xi32>
    %c15_i32_37 = arith.constant 15 : i32
    %119 = vector.broadcast %c15_i32_37 : i32 to vector<1x256xi32>
    %120 = arith.cmpi slt, %20, %119 : vector<1x256xi32>
    %121 = arith.andi %118, %120 : vector<1x256xi1>
    %cst_38 = arith.constant 0.000000e+00 : f32
    %122 = vector.shape_cast %121 : vector<1x256xi1> to vector<1x256xi1>
    %123 = vector.broadcast %122 : vector<1x256xi1> to vector<8x256xi1>
    %124 = vector.broadcast %cst_38 : f32 to vector<8x256xf32>
    %125 = arith.select %123, %116, %124 : vector<8x256xi1>, vector<8x256xf32>
    %126 = vector.extract_strided_slice %74 {offsets = [0, 15], sizes = [8, 241], strides = [1, 1]} : vector<8x256xf32> to vector<8x241xf32>
    %cst_39 = arith.constant 0.000000e+00 : f32
    %127 = vector.broadcast %cst_39 : f32 to vector<8x15xf32>
    %128 = tpu.concatenate %126, %127 in 1 : vector<8x241xf32>, vector<8x15xf32> -> vector<8x256xf32>
    %c1_i32_40 = arith.constant 1 : i32
    %129 = vector.broadcast %c1_i32_40 : i32 to vector<1x256xi32>
    %130 = arith.cmpi sge, %20, %129 : vector<1x256xi32>
    %c17_i32_41 = arith.constant 17 : i32
    %131 = vector.broadcast %c17_i32_41 : i32 to vector<1x256xi32>
    %132 = arith.cmpi slt, %20, %131 : vector<1x256xi32>
    %133 = arith.andi %130, %132 : vector<1x256xi1>
    %cst_42 = arith.constant 0.000000e+00 : f32
    %134 = vector.shape_cast %133 : vector<1x256xi1> to vector<1x256xi1>
    %135 = vector.broadcast %134 : vector<1x256xi1> to vector<8x256xi1>
    %136 = vector.broadcast %cst_42 : f32 to vector<8x256xf32>
    %137 = arith.select %135, %128, %136 : vector<8x256xi1>, vector<8x256xf32>
    %138 = vector.extract_strided_slice %74 {offsets = [0, 16], sizes = [8, 240], strides = [1, 1]} : vector<8x256xf32> to vector<8x240xf32>
    %cst_43 = arith.constant 0.000000e+00 : f32
    %139 = vector.broadcast %cst_43 : f32 to vector<8x16xf32>
    %140 = tpu.concatenate %138, %139 in 1 : vector<8x240xf32>, vector<8x16xf32> -> vector<8x256xf32>
    %141 = vector.extract_strided_slice %74 {offsets = [0, 17], sizes = [8, 239], strides = [1, 1]} : vector<8x256xf32> to vector<8x239xf32>
    %cst_44 = arith.constant 0.000000e+00 : f32
    %142 = vector.broadcast %cst_44 : f32 to vector<8x17xf32>
    %143 = tpu.concatenate %141, %142 in 1 : vector<8x239xf32>, vector<8x17xf32> -> vector<8x256xf32>
    %c-1_i32_45 = arith.constant -1 : i32
    %144 = vector.broadcast %c-1_i32_45 : i32 to vector<1x256xi32>
    %145 = arith.cmpi sge, %20, %144 : vector<1x256xi32>
    %c15_i32_46 = arith.constant 15 : i32
    %146 = vector.broadcast %c15_i32_46 : i32 to vector<1x256xi32>
    %147 = arith.cmpi slt, %20, %146 : vector<1x256xi32>
    %148 = arith.andi %145, %147 : vector<1x256xi1>
    %cst_47 = arith.constant 0.000000e+00 : f32
    %149 = vector.shape_cast %148 : vector<1x256xi1> to vector<1x256xi1>
    %150 = vector.broadcast %149 : vector<1x256xi1> to vector<8x256xi1>
    %151 = vector.broadcast %cst_47 : f32 to vector<8x256xf32>
    %152 = arith.select %150, %143, %151 : vector<8x256xi1>, vector<8x256xf32>
    %153 = tpu.concatenate %86, %89, %101, %113, %74, %125, %137, %140, %152 in 0 : vector<8x256xf32>, vector<8x256xf32>, vector<8x256xf32>, vector<8x256xf32>, vector<8x256xf32>, vector<8x256xf32>, vector<8x256xf32>, vector<8x256xf32>, vector<8x256xf32> -> vector<72x256xf32>
    %154 = arith.truncf %153 : vector<72x256xf32> to vector<72x256xbf16>
    %c0_48 = arith.constant 0 : index
    %c0_49 = arith.constant 0 : index
    %155 = vector.load %arg7[%c0_48, %c0_49] : memref<8x72xbf16, #tpu.memory_space<vmem>>, vector<8x72xbf16>
    %cst_50 = arith.constant dense<0.000000e+00> : vector<8x256xf32>
    %156 = tpu.matmul %155, %154, %cst_50 {dimension_numbers = #tpu.dot_dimension_numbers<[1], [0], [0], [1], [0, 0, 1, 1], [], []>} : vector<8x72xbf16>, vector<72x256xbf16>, vector<8x256xf32> -> vector<8x256xf32>
    %c0_51 = arith.constant 0 : index
    %c0_52 = arith.constant 0 : index
    %157 = vector.load %arg8[%c0_51, %c0_52] : memref<8x1xf32, #tpu.memory_space<vmem>>, vector<8x1xf32>
    %158 = vector.broadcast %157 : vector<8x1xf32> to vector<8x256xf32>
    %159 = arith.addf %156, %158 : vector<8x256xf32>
    %c0_53 = arith.constant 0 : index
    %c0_54 = arith.constant 0 : index
    %c0_55 = arith.constant 0 : index
    %160 = vector.load %arg5[%c0_53, %c0_54, %c0_55] : memref<1x48x3xf32, #tpu.memory_space<vmem>>, vector<1x48x3xf32>
    %161 = vector.shape_cast %160 : vector<1x48x3xf32> to vector<48x3xf32>
    %cst_56 = arith.constant dense<0.000000e+00> : vector<8xf32>
    %162 = vector.multi_reduction <add>, %159, %cst_56 [1] : vector<8x256xf32> to vector<8xf32>
    %163 = vector.shape_cast %162 : vector<8xf32> to vector<8x1xf32>
    %cst_57 = arith.constant 2.560000e+02 : f32
    %164 = vector.broadcast %cst_57 : f32 to vector<8x1xf32>
    %165 = arith.divf %163, %164 : vector<8x1xf32>
    %166 = vector.broadcast %165 : vector<8x1xf32> to vector<8x256xf32>
    %167 = arith.subf %159, %166 : vector<8x256xf32>
    %168 = arith.mulf %167, %167 : vector<8x256xf32>
    %cst_58 = arith.constant dense<0.000000e+00> : vector<8xf32>
    %169 = vector.multi_reduction <add>, %168, %cst_58 [1] : vector<8x256xf32> to vector<8xf32>
    %170 = vector.shape_cast %169 : vector<8xf32> to vector<8x1xf32>
    %cst_59 = arith.constant 2.560000e+02 : f32
    %171 = vector.broadcast %cst_59 : f32 to vector<8x1xf32>
    %172 = arith.divf %170, %171 : vector<8x1xf32>
    %cst_60 = arith.constant 9.99999974E-6 : f32
    %173 = vector.broadcast %cst_60 : f32 to vector<8x1xf32>
    %174 = arith.addf %172, %173 : vector<8x1xf32>
    %175 = math.rsqrt %174 : vector<8x1xf32>
    %176 = vector.broadcast %175 : vector<8x1xf32> to vector<8x256xf32>
    %177 = arith.mulf %167, %176 : vector<8x256xf32>
    %cst_61 = arith.constant dense<0.000000e+00> : vector<48x256xf32>
    %178 = tpu.matmul %161, %3, %cst_61 {dimension_numbers = #tpu.dot_dimension_numbers<[1], [0], [0], [1], [0, 0, 1, 1], [], []>} : vector<48x3xf32>, vector<3x256xf32>, vector<48x256xf32> -> vector<48x256xf32>
    %179 = vector.extract_strided_slice %178 {offsets = [0, 0], sizes = [8, 256], strides = [1, 1]} : vector<48x256xf32> to vector<8x256xf32>
    %180 = vector.extract_strided_slice %178 {offsets = [16, 0], sizes = [8, 256], strides = [1, 1]} : vector<48x256xf32> to vector<8x256xf32>
    %181 = arith.mulf %179, %180 : vector<8x256xf32>
    %182 = vector.extract_strided_slice %178 {offsets = [8, 0], sizes = [8, 256], strides = [1, 1]} : vector<48x256xf32> to vector<8x256xf32>
    %183 = arith.addf %181, %182 : vector<8x256xf32>
    %184 = vector.extract_strided_slice %178 {offsets = [24, 0], sizes = [8, 256], strides = [1, 1]} : vector<48x256xf32> to vector<8x256xf32>
    %185 = vector.extract_strided_slice %178 {offsets = [40, 0], sizes = [8, 256], strides = [1, 1]} : vector<48x256xf32> to vector<8x256xf32>
    %186 = arith.mulf %184, %185 : vector<8x256xf32>
    %187 = vector.extract_strided_slice %178 {offsets = [32, 0], sizes = [8, 256], strides = [1, 1]} : vector<48x256xf32> to vector<8x256xf32>
    %188 = arith.addf %186, %187 : vector<8x256xf32>
    %189 = arith.mulf %183, %177 : vector<8x256xf32>
    %190 = arith.addf %189, %188 : vector<8x256xf32>
    %cst_62 = arith.constant 0.000000e+00 : f32
    %191 = vector.broadcast %cst_62 : f32 to vector<8x256xf32>
    %192 = arith.cmpf oge, %190, %191 : vector<8x256xf32>
    %cst_63 = arith.constant 4.000000e-02 : f32
    %193 = vector.broadcast %cst_63 : f32 to vector<8x256xf32>
    %194 = arith.mulf %193, %190 : vector<8x256xf32>
    %195 = arith.select %192, %190, %194 : vector<8x256xi1>, vector<8x256xf32>
    %cst_64 = arith.constant 0.000000e+00 : f32
    %196 = vector.broadcast %cst_64 : f32 to vector<8x17xf32>
    %197 = vector.extract_strided_slice %195 {offsets = [0, 0], sizes = [8, 239], strides = [1, 1]} : vector<8x256xf32> to vector<8x239xf32>
    %198 = tpu.concatenate %196, %197 in 1 : vector<8x17xf32>, vector<8x239xf32> -> vector<8x256xf32>
    %c1_i32_65 = arith.constant 1 : i32
    %199 = vector.broadcast %c1_i32_65 : i32 to vector<1x256xi32>
    %200 = arith.cmpi sge, %20, %199 : vector<1x256xi32>
    %c17_i32_66 = arith.constant 17 : i32
    %201 = vector.broadcast %c17_i32_66 : i32 to vector<1x256xi32>
    %202 = arith.cmpi slt, %20, %201 : vector<1x256xi32>
    %203 = arith.andi %200, %202 : vector<1x256xi1>
    %cst_67 = arith.constant 0.000000e+00 : f32
    %204 = vector.shape_cast %203 : vector<1x256xi1> to vector<1x256xi1>
    %205 = vector.broadcast %204 : vector<1x256xi1> to vector<8x256xi1>
    %206 = vector.broadcast %cst_67 : f32 to vector<8x256xf32>
    %207 = arith.select %205, %198, %206 : vector<8x256xi1>, vector<8x256xf32>
    %cst_68 = arith.constant 0.000000e+00 : f32
    %208 = vector.broadcast %cst_68 : f32 to vector<8x16xf32>
    %209 = vector.extract_strided_slice %195 {offsets = [0, 0], sizes = [8, 240], strides = [1, 1]} : vector<8x256xf32> to vector<8x240xf32>
    %210 = tpu.concatenate %208, %209 in 1 : vector<8x16xf32>, vector<8x240xf32> -> vector<8x256xf32>
    %cst_69 = arith.constant 0.000000e+00 : f32
    %211 = vector.broadcast %cst_69 : f32 to vector<8x15xf32>
    %212 = vector.extract_strided_slice %195 {offsets = [0, 0], sizes = [8, 241], strides = [1, 1]} : vector<8x256xf32> to vector<8x241xf32>
    %213 = tpu.concatenate %211, %212 in 1 : vector<8x15xf32>, vector<8x241xf32> -> vector<8x256xf32>
    %c-1_i32_70 = arith.constant -1 : i32
    %214 = vector.broadcast %c-1_i32_70 : i32 to vector<1x256xi32>
    %215 = arith.cmpi sge, %20, %214 : vector<1x256xi32>
    %c15_i32_71 = arith.constant 15 : i32
    %216 = vector.broadcast %c15_i32_71 : i32 to vector<1x256xi32>
    %217 = arith.cmpi slt, %20, %216 : vector<1x256xi32>
    %218 = arith.andi %215, %217 : vector<1x256xi1>
    %cst_72 = arith.constant 0.000000e+00 : f32
    %219 = vector.shape_cast %218 : vector<1x256xi1> to vector<1x256xi1>
    %220 = vector.broadcast %219 : vector<1x256xi1> to vector<8x256xi1>
    %221 = vector.broadcast %cst_72 : f32 to vector<8x256xf32>
    %222 = arith.select %220, %213, %221 : vector<8x256xi1>, vector<8x256xf32>
    %cst_73 = arith.constant 0.000000e+00 : f32
    %223 = vector.broadcast %cst_73 : f32 to vector<8x1xf32>
    %224 = vector.extract_strided_slice %195 {offsets = [0, 0], sizes = [8, 255], strides = [1, 1]} : vector<8x256xf32> to vector<8x255xf32>
    %225 = tpu.concatenate %223, %224 in 1 : vector<8x1xf32>, vector<8x255xf32> -> vector<8x256xf32>
    %c1_i32_74 = arith.constant 1 : i32
    %226 = vector.broadcast %c1_i32_74 : i32 to vector<1x256xi32>
    %227 = arith.cmpi sge, %20, %226 : vector<1x256xi32>
    %c17_i32_75 = arith.constant 17 : i32
    %228 = vector.broadcast %c17_i32_75 : i32 to vector<1x256xi32>
    %229 = arith.cmpi slt, %20, %228 : vector<1x256xi32>
    %230 = arith.andi %227, %229 : vector<1x256xi1>
    %cst_76 = arith.constant 0.000000e+00 : f32
    %231 = vector.shape_cast %230 : vector<1x256xi1> to vector<1x256xi1>
    %232 = vector.broadcast %231 : vector<1x256xi1> to vector<8x256xi1>
    %233 = vector.broadcast %cst_76 : f32 to vector<8x256xf32>
    %234 = arith.select %232, %225, %233 : vector<8x256xi1>, vector<8x256xf32>
    %235 = vector.extract_strided_slice %195 {offsets = [0, 1], sizes = [8, 255], strides = [1, 1]} : vector<8x256xf32> to vector<8x255xf32>
    %cst_77 = arith.constant 0.000000e+00 : f32
    %236 = vector.broadcast %cst_77 : f32 to vector<8x1xf32>
    %237 = tpu.concatenate %235, %236 in 1 : vector<8x255xf32>, vector<8x1xf32> -> vector<8x256xf32>
    %c-1_i32_78 = arith.constant -1 : i32
    %238 = vector.broadcast %c-1_i32_78 : i32 to vector<1x256xi32>
    %239 = arith.cmpi sge, %20, %238 : vector<1x256xi32>
    %c15_i32_79 = arith.constant 15 : i32
    %240 = vector.broadcast %c15_i32_79 : i32 to vector<1x256xi32>
    %241 = arith.cmpi slt, %20, %240 : vector<1x256xi32>
    %242 = arith.andi %239, %241 : vector<1x256xi1>
    %cst_80 = arith.constant 0.000000e+00 : f32
    %243 = vector.shape_cast %242 : vector<1x256xi1> to vector<1x256xi1>
    %244 = vector.broadcast %243 : vector<1x256xi1> to vector<8x256xi1>
    %245 = vector.broadcast %cst_80 : f32 to vector<8x256xf32>
    %246 = arith.select %244, %237, %245 : vector<8x256xi1>, vector<8x256xf32>
    %247 = vector.extract_strided_slice %195 {offsets = [0, 15], sizes = [8, 241], strides = [1, 1]} : vector<8x256xf32> to vector<8x241xf32>
    %cst_81 = arith.constant 0.000000e+00 : f32
    %248 = vector.broadcast %cst_81 : f32 to vector<8x15xf32>
    %249 = tpu.concatenate %247, %248 in 1 : vector<8x241xf32>, vector<8x15xf32> -> vector<8x256xf32>
    %c1_i32_82 = arith.constant 1 : i32
    %250 = vector.broadcast %c1_i32_82 : i32 to vector<1x256xi32>
    %251 = arith.cmpi sge, %20, %250 : vector<1x256xi32>
    %c17_i32_83 = arith.constant 17 : i32
    %252 = vector.broadcast %c17_i32_83 : i32 to vector<1x256xi32>
    %253 = arith.cmpi slt, %20, %252 : vector<1x256xi32>
    %254 = arith.andi %251, %253 : vector<1x256xi1>
    %cst_84 = arith.constant 0.000000e+00 : f32
    %255 = vector.shape_cast %254 : vector<1x256xi1> to vector<1x256xi1>
    %256 = vector.broadcast %255 : vector<1x256xi1> to vector<8x256xi1>
    %257 = vector.broadcast %cst_84 : f32 to vector<8x256xf32>
    %258 = arith.select %256, %249, %257 : vector<8x256xi1>, vector<8x256xf32>
    %259 = vector.extract_strided_slice %195 {offsets = [0, 16], sizes = [8, 240], strides = [1, 1]} : vector<8x256xf32> to vector<8x240xf32>
    %cst_85 = arith.constant 0.000000e+00 : f32
    %260 = vector.broadcast %cst_85 : f32 to vector<8x16xf32>
    %261 = tpu.concatenate %259, %260 in 1 : vector<8x240xf32>, vector<8x16xf32> -> vector<8x256xf32>
    %262 = vector.extract_strided_slice %195 {offsets = [0, 17], sizes = [8, 239], strides = [1, 1]} : vector<8x256xf32> to vector<8x239xf32>
    %cst_86 = arith.constant 0.000000e+00 : f32
    %263 = vector.broadcast %cst_86 : f32 to vector<8x17xf32>
    %264 = tpu.concatenate %262, %263 in 1 : vector<8x239xf32>, vector<8x17xf32> -> vector<8x256xf32>
    %c-1_i32_87 = arith.constant -1 : i32
    %265 = vector.broadcast %c-1_i32_87 : i32 to vector<1x256xi32>
    %266 = arith.cmpi sge, %20, %265 : vector<1x256xi32>
    %c15_i32_88 = arith.constant 15 : i32
    %267 = vector.broadcast %c15_i32_88 : i32 to vector<1x256xi32>
    %268 = arith.cmpi slt, %20, %267 : vector<1x256xi32>
    %269 = arith.andi %266, %268 : vector<1x256xi1>
    %cst_89 = arith.constant 0.000000e+00 : f32
    %270 = vector.shape_cast %269 : vector<1x256xi1> to vector<1x256xi1>
    %271 = vector.broadcast %270 : vector<1x256xi1> to vector<8x256xi1>
    %272 = vector.broadcast %cst_89 : f32 to vector<8x256xf32>
    %273 = arith.select %271, %264, %272 : vector<8x256xi1>, vector<8x256xf32>
    %274 = tpu.concatenate %207, %210, %222, %234, %195, %246, %258, %261, %273 in 0 : vector<8x256xf32>, vector<8x256xf32>, vector<8x256xf32>, vector<8x256xf32>, vector<8x256xf32>, vector<8x256xf32>, vector<8x256xf32>, vector<8x256xf32>, vector<8x256xf32> -> vector<72x256xf32>
    %275 = arith.truncf %274 : vector<72x256xf32> to vector<72x256xbf16>
    %c0_90 = arith.constant 0 : index
    %c0_91 = arith.constant 0 : index
    %276 = vector.load %arg9[%c0_90, %c0_91] : memref<8x72xbf16, #tpu.memory_space<vmem>>, vector<8x72xbf16>
    %cst_92 = arith.constant dense<0.000000e+00> : vector<8x256xf32>
    %277 = tpu.matmul %276, %275, %cst_92 {dimension_numbers = #tpu.dot_dimension_numbers<[1], [0], [0], [1], [0, 0, 1, 1], [], []>} : vector<8x72xbf16>, vector<72x256xbf16>, vector<8x256xf32> -> vector<8x256xf32>
    %c0_93 = arith.constant 0 : index
    %c0_94 = arith.constant 0 : index
    %278 = vector.load %arg10[%c0_93, %c0_94] : memref<8x1xf32, #tpu.memory_space<vmem>>, vector<8x1xf32>
    %279 = vector.broadcast %278 : vector<8x1xf32> to vector<8x256xf32>
    %280 = arith.addf %277, %279 : vector<8x256xf32>
    %281 = arith.addf %54, %280 : vector<8x256xf32>
    %c0_95 = arith.constant 0 : index
    %c0_96 = arith.constant 0 : index
    %c0_97 = arith.constant 0 : index
    %282 = vector.load %arg11[%c0_95, %c0_96, %c0_97] : memref<1x8x256xf32, #tpu.memory_space<vmem>>, vector<1x8x256xf32>
    %283 = vector.shape_cast %282 : vector<1x8x256xf32> to vector<8x256xf32>
    %284 = vector.shape_cast %281 : vector<8x256xf32> to vector<1x8x256xf32>
    tpu.vector_store %arg11[%c0_95, %c0_96, %c0_97], %284 {strides = array<i32>} : memref<1x8x256xf32, #tpu.memory_space<vmem>>, vector<1x8x256xf32>,
    return
  }
  func.func @transform_0(%arg0: i32) -> (i32, i32, i32) {
    %c0_i32 = arith.constant 0 : i32
    %c0_i32_0 = arith.constant 0 : i32
    %c0_i32_1 = arith.constant 0 : i32
    return %arg0, %c0_i32, %c0_i32_0 : i32, i32, i32
  }
  func.func @transform_1(%arg0: i32) -> (i32, i32, i32) {
    %c0_i32 = arith.constant 0 : i32
    %c0_i32_0 = arith.constant 0 : i32
    %c0_i32_1 = arith.constant 0 : i32
    return %arg0, %c0_i32, %c0_i32_0 : i32, i32, i32
  }
  func.func @transform_2(%arg0: i32) -> (i32, i32, i32) {
    %c0_i32 = arith.constant 0 : i32
    %c0_i32_0 = arith.constant 0 : i32
    %c0_i32_1 = arith.constant 0 : i32
    return %arg0, %c0_i32, %c0_i32_0 : i32, i32, i32
  }
  func.func @transform_3(%arg0: i32) -> (i32, i32, i32) {
    %c0_i32 = arith.constant 0 : i32
    %c0_i32_0 = arith.constant 0 : i32
    %c0_i32_1 = arith.constant 0 : i32
    return %arg0, %c0_i32, %c0_i32_0 : i32, i32, i32
  }
  func.func @transform_4(%arg0: i32) -> (i32, i32, i32) {
    %c0_i32 = arith.constant 0 : i32
    %c0_i32_0 = arith.constant 0 : i32
    %c0_i32_1 = arith.constant 0 : i32
    return %arg0, %c0_i32, %c0_i32_0 : i32, i32, i32
  }
  func.func @transform_5(%arg0: i32) -> (i32, i32) {
    %c0_i32 = arith.constant 0 : i32
    %c0_i32_0 = arith.constant 0 : i32
    %c0_i32_1 = arith.constant 0 : i32
    return %c0_i32, %c0_i32_0 : i32, i32
  }
  func.func @transform_6(%arg0: i32) -> (i32, i32) {
    %c0_i32 = arith.constant 0 : i32
    %c0_i32_0 = arith.constant 0 : i32
    %c0_i32_1 = arith.constant 0 : i32
    return %c0_i32, %c0_i32_0 : i32, i32
  }
  func.func @transform_7(%arg0: i32) -> (i32, i32) {
    %c0_i32 = arith.constant 0 : i32
    %c0_i32_0 = arith.constant 0 : i32
    %c0_i32_1 = arith.constant 0 : i32
    return %c0_i32, %c0_i32_0 : i32, i32
  }
  func.func @transform_8(%arg0: i32) -> (i32, i32) {
    %c0_i32 = arith.constant 0 : i32
    %c0_i32_0 = arith.constant 0 : i32
    %c0_i32_1 = arith.constant 0 : i32
    return %c0_i32, %c0_i32_0 : i32, i32
  }
  func.func @transform_9(%arg0: i32) -> (i32, i32) {
    %c0_i32 = arith.constant 0 : i32
    %c0_i32_0 = arith.constant 0 : i32
    %c0_i32_1 = arith.constant 0 : i32
    return %c0_i32, %c0_i32_0 : i32, i32
  }
  func.func @transform_10(%arg0: i32) -> (i32, i32, i32) {
    %c0_i32 = arith.constant 0 : i32
    %c0_i32_0 = arith.constant 0 : i32
    %c0_i32_1 = arith.constant 0 : i32
    return %arg0, %c0_i32, %c0_i32_0 : i32, i32, i32
  }
}

</mosaic_0001>

<bundles_post_ra>
// kernel: tpu_custom_call.1
= control target key start
LH: loop header
LB: loop body
LE: loop exit
PB: predicated region body
PF: predicated region fallthrough
CT: control target
= control target key end

     0   :  { %15 = vsyncpa [#allocation3], 0  ;;  %s2099_s0 = inlined_call_operand.vmem [shape: f32[2,8,256], index: 0, kind: input, shape index: {}]   ;;  %s2100_s1 = inlined_call_operand.vmem [shape: f32[2,3,256], index: 1, kind: input, shape index: {}]   ;;  %s2101_s2 = inlined_call_operand.vmem [shape: f32[2,48,3], index: 2, kind: input, shape index: {}]   ;;  %s2102_s3 = inlined_call_operand.vmem [shape: f32[2,48,3], index: 3, kind: input, shape index: {}]   ;;  %s2103_s4 = inlined_call_operand.vmem [shape: f32[2,48,3], index: 4, kind: input, shape index: {}]   ;;  %s2104_s5 = inlined_call_operand.vmem [shape: bf16[8,8], index: 5, kind: input, shape index: {}]   ;;  %s2105_s6 = inlined_call_operand.vmem [shape: bf16[8,72], index: 6, kind: input, shape index: {}]   ;;  %s2106_s7 = inlined_call_operand.vmem [shape: f32[8,1], index: 7, kind: input, shape index: {}]   ;;  %s2107_s8 = inlined_call_operand.vmem [shape: bf16[8,72], index: 8, kind: input, shape index: {}]   ;;  %s2108_s9 = inlined_call_operand.vmem [shape: f32[8,1], index: 9, kind: input, shape index: {}]   ;;  %s2109_s10 = inlined_call_operand.hbm [shape: f32[2,8,256], index: 10, kind: output, shape index: {}]  }
   0x1   :  { %17 = vsyncpa [#allocation3 + $0x1], 0  ;;  %s1722_s13 = smov 0   ;;  %s1724_s14 = smov 0  }
   0x2   :  { %s1726_s15 = smov 0   ;;  %s1728_s16 = smov 0  }
   0x3 LB: > { %s1743_s17 = sadd.s32 4294967295, %s1654_s16   ;;  %s1335_s18 = sadd.s32 4294967294, %s1654_s16   ;;  %s1654_s16 = sphi %s1728_s16, %s2175_s16   ;;  %s1650_s15 = sphi %s1726_s15, %s2174_s15   ;;  %s1646_s14 = sphi %s1724_s14, %s2173_s14   ;;  %s1642_s13 = sphi %s1722_s13, %s2172_s13  }
   0x4   : > { %s1747_s19 = sadd.s32 1, %s1654_s16   ;;  %s265_s20 = sadd.s32 1, %s1650_s15 }
   0x5   : > { %s262_s21 = ssub.s32 %s1654_s16, %s1747_s19  ;;  %p275_p0 = scmp.ne.s32.totalorder %s1650_s15, %s1646_s14 }
   0x6   : > { %p263_p1 = scmp.eq.s32.totalorder %s262_s21, 0  ;;  %p276_p2 = scmp.eq.s32.totalorder %s1743_s17, 1 }
   0x7   : > { %p281_p3 = scmp.ne.s32.totalorder %s1646_s14, %s1642_s13  ;;  %p282_p4 = scmp.eq.s32.totalorder %s1335_s18, 1 }
   0x8   : > { %s1758_s22 = scalar_select %p263_p1, %s1650_s15, %s265_s20  }
   0x9   : > { %p1760_p5 = por %p276_p2, %p275_p0  ;;  %p1764_p6 = por %p282_p4, %p281_p3 }
   0xa   : > { %p1338_p7 = scmp.ge.s32.totalorder %s1654_s16, 1  ;;  %p355_p8 = scmp.lt.s32.totalorder %s1654_s16, 3 }
   0xc   : > { %p356_p9 = pnand %p1338_p7, %p355_p8 }
   0xd   : > { %p413_p10 = scmp.lt.s32.totalorder (!%p356_p9), %s1743_s17, 1  ;;  %s1658_s11 = smov (!%p356_p9), 112  }
   0xe   : > { %359 = sbr.rel (%p356_p9) target bundleno = 1164 (0x48c), region = 60  ;;  %s1659_s12 = smov (!%p356_p9), 111  }
   0xf   : > { %s1661_s21 = smov (!%p356_p9), 113  }
  0x13   : > { %s414_s25 = scalar_select %p413_p10, %s1743_s17, 1  ;;  %vm530_vm0 = vcmask 1042432   ;;  %vm511_vm1 = vcmask 23552   ;;  %v1656_v18 = vmov 256.0   ;;  %vm2114_vm9 = vcmask 908288  }
  0x14   : > { %1586 = vrcp.f32 %v1656_v18  ;;  %vm2113_vm11 = vcmask 1043456   ;;  %vm2112_vm13 = vcmask 924672   ;;  %vm2111_vm14 = vcmask 916480  }
  0x15   : > { %s1450_s26 = sshll.u32 %s414_s25, 4  ;;  %s1451_s27 = sshll.u32 %s414_s25, 3 }
  0x16   : > { %s417_s30 = scalar_lea.vmem %s2099_s0, %s1450_s26  ;;  %s422_s18 = scalar_lea.vmem %s2100_s1, %s1451_s27 }
  0x17   : > { %v1778_v0 = vld [vmem:[%s417_s30] sm:$0xff]  ;;  %v1780_v1 = vld [vmem:[%s417_s30 + $0x8] sm:$0xff]  ;;  %s1784_s20 = smul.u32 48, %s414_s25  ;;  %s2121_s30 = smov 15  }
  0x18   : > { %v441_v2 = vld [vmem:[%s422_s18] sm:$0x77]  ;;  %v469_v3 = vadd.f32 %v1780_v1, %v1778_v0  ;;  %s2122_s18 = smov 127   ;;  %s1662_s26 = smov 17  }
  0x19   : > { %508 = vst [vmem:[#allocation1] ss:$2 sm:$0xff] %v441_v2  ;;  %s1790_s28 = scalar_lea.vmem %s2101_s2, %s1784_s20  ;;  %s432_s29 = scalar_lea.vmem %s2102_s3, %s1784_s20 }
  0x1a   : > { %470 = vadd.xlane.f32.xlu0 %v469_v3  ;;  %v501_v4 = vld [vmem:[%s1790_s28] sm:$0xff]  ;;  %v502_v8 = vld [vmem:[%s1790_s28 + $0x8] sm:$0xff]  ;;  %v503_v12 = vld [vmem:[%s1790_s28 + $0x10] sm:$0xff]  ;;  %v1587_v20 = vpop.eup %1586  ;;  %s2120_s25 = smov 16   ;;  %s410_s27 = sand.u32 1, %s1646_s14  }
  0x1b   : > { %v620_v7 = vld [vmem:[%s432_s29] sm:$0xff]  ;;  %v621_v11 = vld [vmem:[%s432_s29 + $0x8] sm:$0xff]  ;;  %v622_v13 = vld [vmem:[%s432_s29 + $0x10] sm:$0xff]  ;;  %v473_v21 = vmul.f32 256.0, %v1587_v20  ;;  %vm477_vm2 = vweird.f32 %v1587_v20 }
  0x1c   : > { %v623_v14 = vld [vmem:[%s432_s29 + $0x18] sm:$0xff]  ;;  %v624_v15 = vld [vmem:[%s432_s29 + $0x20] sm:$0xff]  ;;  %v625_v16 = vld [vmem:[%s432_s29 + $0x28] sm:$0xff]  ;;  %s1452_s29 = sshll.u32 %s1743_s17, 4  ;;  %s1212_s17 = scalar_lea.sflag [#allocation3], %s410_s27 }
  0x1d   : > { %v504_v17 = vld [vmem:[%s1790_s28 + $0x18] sm:$0xff]  ;;  %v505_v19 = vld [vmem:[%s1790_s28 + $0x20] sm:$0xff]  ;;  %v506_v22 = vld [vmem:[%s1790_s28 + $0x28] sm:$0xff]  ;;  %v474_v23 = vsub.f32 1.0, %v473_v21  ;;  %s1663_s28 = smov 1  }
  0x1f   : > { %v475_v24 = vmul.f32 %v1587_v20, %v474_v23 }
  0x20   : > { %v509_v5 = vld.sshfl [vmem:[#allocation1] sm:$0xff pattern:$0x75316420]  ;;  %v510_v6 = vld.sshfl [vmem:[#allocation1 + $0x8] sm:$0xff pattern:$0x75316420] }
  0x21   : > { %626 = vst [vmem:[#allocation1] ss:$2 sm:$0xff] %v441_v2  ;;  %1347 = vmatpush.msk.msra.mxu0 %vm530_vm0, %v509_v5  ;;  %1354 = vmatpush.msk.msra.mxu1 %vm530_vm0, %v510_v6  ;;  %v476_v25 = vadd.f32 %v1587_v20, %v475_v24 }
  0x22   : > { %1348 = vmatmul.msk.f32.vlgmr.msra.gmra.mxu0 %vm511_vm1, %v501_v4  ;;  %1355 = vmatmul.msk.f32.vlgmr.msra.gmra.mxu1 %vm511_vm1, %v501_v4 }
  0x23   : > { %v1830_v26 = vsel %vm477_vm2, %v1587_v20, %v476_v25  ;;  %vm2110_vm2 = vcmask 1039360  }
  0x28   : > { %v627_v9 = vld.sshfl [vmem:[#allocation1] sm:$0xff pattern:$0x75316420]  ;;  %v628_v10 = vld.sshfl [vmem:[#allocation1 + $0x8] sm:$0xff pattern:$0x75316420] }
  0x29   : > { %1361 = vmatpush.msk.msra.mxu2 %vm530_vm0, %v627_v9  ;;  %1368 = vmatpush.msk.msra.mxu3 %vm530_vm0, %v628_v10  ;;  %930 = vst [vmem:[#allocation1] ss:$2 sm:$0xff] %v441_v2 }
  0x2a   : > { %1362 = vmatmul.msk.f32.vlgmr.msra.gmra.mxu2 %vm511_vm1, %v620_v7  ;;  %1369 = vmatmul.msk.f32.vlgmr.msra.gmra.mxu3 %vm511_vm1, %v620_v7 }
  0x2b   : > { %1349 = vmatmul.msk.f32.gmra.mxu0 %vm511_vm1, %v502_v8  ;;  %1356 = vmatmul.msk.f32.gmra.mxu1 %vm511_vm1, %v502_v8 }
  0x32   : > { %1363 = vmatmul.msk.f32.gmra.mxu2 %vm511_vm1, %v621_v11  ;;  %1370 = vmatmul.msk.f32.gmra.mxu3 %vm511_vm1, %v621_v11 }
  0x33   : > { %1350 = vmatmul.msk.f32.gmra.mxu0 %vm511_vm1, %v503_v12  ;;  %1357 = vmatmul.msk.f32.gmra.mxu1 %vm511_vm1, %v503_v12 }
  0x3a   : > { %1364 = vmatmul.msk.f32.gmra.mxu2 %vm511_vm1, %v622_v13  ;;  %1371 = vmatmul.msk.f32.gmra.mxu3 %vm511_vm1, %v622_v13 }
  0x3b   : > { %1351 = vmatmul.msk.f32.gmra.mxu0 %vm511_vm1, %v504_v17  ;;  %1358 = vmatmul.msk.f32.gmra.mxu1 %vm511_vm1, %v504_v17 }
  0x42   : > { %1365 = vmatmul.msk.f32.gmra.mxu2 %vm511_vm1, %v623_v14  ;;  %1372 = vmatmul.msk.f32.gmra.mxu3 %vm511_vm1, %v623_v14 }
  0x43   : > { %1352 = vmatmul.msk.f32.gmra.mxu0 %vm511_vm1, %v505_v19  ;;  %1359 = vmatmul.msk.f32.gmra.mxu1 %vm511_vm1, %v505_v19 }
  0x4a   : > { %1366 = vmatmul.msk.f32.gmra.mxu2 %vm511_vm1, %v624_v15  ;;  %1373 = vmatmul.msk.f32.gmra.mxu3 %vm511_vm1, %v624_v15 }
  0x4b   : > { %1353 = vmatmul.msk.f32.gmra.mxu0 %vm511_vm1, %v506_v22  ;;  %1360 = vmatmul.msk.f32.gmra.mxu1 %vm511_vm1, %v506_v22 }
  0x52   : > { %1367 = vmatmul.msk.f32.gmra.mxu2 %vm511_vm1, %v625_v16  ;;  %1374 = vmatmul.msk.f32.gmra.mxu3 %vm511_vm1, %v625_v16 }
  0x8d   : > { %v471_v27 = vpop.xlane.xlu0 %470 }
  0x8e   : > { %v479_v28 = vmul.f32 %v1830_v26, %v471_v27 }
  0x90   : > { %v480_v29 = vsub.f32 %v1778_v0, %v479_v28  ;;  %v481_v30 = vsub.f32 %v1780_v1, %v479_v28 }
  0x92   : > { %v482_v31 = vmul.f32 %v480_v29, %v480_v29  ;;  %v483_v32 = vmul.f32 %v481_v30, %v481_v30 }
  0x94   : > { %v484_v33 = vadd.f32 %v483_v32, %v482_v31 }
  0x96   : > { %485 = vadd.xlane.f32.xlu0 %v484_v33 }
  0x9f   : > { %v552_v34 = vpop.f32.mrf.mxu0  ;;  %v587_v35 = vpop.f32.mrf.mxu1 }
  0xa8   : > { %v555_v36 = vpop.f32.mrf.mxu0  ;;  %v590_v37 = vpop.f32.mrf.mxu1 }
  0xad   : > { %v668_v44 = vpop.f32.mrf.mxu2  ;;  %v703_v45 = vpop.f32.mrf.mxu3 }
  0xb0   : > { %v558_v38 = vpop.f32.mrf.mxu0  ;;  %v593_v39 = vpop.f32.mrf.mxu1 }
  0xb1   : > { %v605_v40 = vmul.f32 %v558_v38, %v552_v34  ;;  %v606_v41 = vmul.f32 %v593_v39, %v587_v35 }
  0xb3   : > { %v607_v42 = vadd.f32 %v605_v40, %v555_v36  ;;  %v608_v43 = vadd.f32 %v606_v41, %v590_v37  ;;  %v442_v36 = vlaneseq }
  0xb5   : > { %v671_v48 = vpop.f32.mrf.mxu2  ;;  %v706_v49 = vpop.f32.mrf.mxu3  ;;  %v443_v37 = vand.u32 127, %v442_v36 }
  0xb7   : > { %v444_v38 = vadd.s32 128, %v443_v37  ;;  %v449_v40 = vand.u32 15, %v443_v37 }
  0xb8   : > { %v561_v46 = vpop.f32.mrf.mxu0  ;;  %v596_v47 = vpop.f32.mrf.mxu1 }
  0xb9   : > { %v456_v41 = vand.u32 15, %v444_v38  ;;  %vm1854_vm8 = vcmp.lt.s32.totalorder %v449_v40, 15  ;;  %vm1873_vm12 = vcmp.ge.s32.totalorder %v449_v40, 1 }
  0xbb   : > { %vm1858_vm10 = vcmp.lt.s32.totalorder %v456_v41, 15  ;;  %vm1877_vm15 = vcmp.ge.s32.totalorder %v456_v41, 1 }
  0xbd   : > { %v674_v52 = vpop.f32.mrf.mxu2  ;;  %v709_v53 = vpop.f32.mrf.mxu3 }
  0xbe   : > { %v721_v10 = vmul.f32 %v674_v52, %v668_v44  ;;  %v722_v11 = vmul.f32 %v709_v53, %v703_v45 }
  0xc0   : > { %v564_v50 = vpop.f32.mrf.mxu0  ;;  %v599_v51 = vpop.f32.mrf.mxu1  ;;  %v723_v16 = vadd.f32 %v721_v10, %v671_v48  ;;  %v724_v17 = vadd.f32 %v722_v11, %v706_v49  ;;  %v1665_v48 = vmov 0  }
  0xc1   : > { %1544 = vset.pattern.permute.xlu2 %v1665_v48  ;;  %1585 = vset.pattern.permute.xlu0 %v1665_v48  ;;  %v932_v48 = vld.sshfl [vmem:[#allocation1 + $0x8] sm:$0xff pattern:$0x75316420] }
  0xc2   : > { %1409 = vmatpush.msk.msrb.mxu3 %vm530_vm0, %v932_v48 }
  0xc5   : > { %v677_v60 = vpop.f32.mrf.mxu2  ;;  %v712_v61 = vpop.f32.mrf.mxu3 }
  0xc8   : > { %v567_v54 = vpop.f32.mrf.mxu0  ;;  %v602_v56 = vpop.f32.mrf.mxu1 }
  0xc9   : > { %v609_v55 = vmul.f32 %v567_v54, %v561_v46  ;;  %v610_v57 = vmul.f32 %v602_v56, %v596_v47  ;;  %v856_v47 = vld [vmem:[%s2106_s7] sm:$0xff] }
  0xcb   : > { %v611_v58 = vadd.f32 %v609_v55, %v564_v50  ;;  %v612_v59 = vadd.f32 %v610_v57, %v599_v51 }
  0xcd   : > { %v680_v1 = vpop.f32.mrf.mxu2  ;;  %v715_v2 = vpop.f32.mrf.mxu3 }
  0xd5   : > { %v683_v7 = vpop.f32.mrf.mxu2  ;;  %v718_v8 = vpop.f32.mrf.mxu3 }
  0xd6   : > { %v725_v13 = vmul.f32 %v683_v7, %v677_v60  ;;  %v726_v14 = vmul.f32 %v718_v8, %v712_v61  ;;  %v617_v60 = vld [vmem:[%s2104_s5] sm:$0xf] }
  0xd8   : > { %v727_v20 = vadd.f32 %v725_v13, %v680_v1  ;;  %v728_v21 = vadd.f32 %v726_v14, %v715_v2 }
 0x109   : > { %v486_v62 = vpop.xlane.xlu0 %485 }
 0x10a   : > { %v487_v63 = vmul.f32 %v486_v62, %v1830_v26 }
 0x10c   : > { %v488_v0 = vadd.f32 1e-05, %v487_v63 }
 0x10e   : > { %1588 = vrsqrt.f32 %v488_v0  ;;  %vm495_vm4 = vweird.f32 %v488_v0 }
 0x114   : > { %v1589_v3 = vpop.eup %1588 }
 0x115   : > { %v490_v4 = vmul.f32 %v1589_v3, %v488_v0  ;;  %vm496_vm3 = vweird.f32 %v1589_v3 }
 0x116   : > { %vm497_vm5 = vmor %vm495_vm4, %vm496_vm3  ;;  %vm1666_vm3 = vmmov 1  }
 0x117   : > { %v491_v5 = vmul.f32 %v1589_v3, %v490_v4  ;;  %vm1884_vm4 = vmpackc.low %vm1666_vm3, %vm1873_vm12 }
 0x119   : > { %v492_v6 = vmul.f32 0.5, %v491_v5 }
 0x11b   : > { %v493_v9 = vsub.f32 1.5, %v492_v6 }
 0x11d   : > { %v494_v12 = vmul.f32 %v1589_v3, %v493_v9 }
 0x11f   : > { %v498_v15 = vsel %vm497_vm5, %v1589_v3, %v494_v12  ;;  %vm1894_vm5 = vmpackc.low %vm2111_vm14, %vm1877_vm15 }
 0x120   : > { %v499_v18 = vmul.f32 %v498_v15, %v480_v29  ;;  %v500_v19 = vmul.f32 %v498_v15, %v481_v30 }
 0x122   : > { %v729_v22 = vmul.f32 %v723_v16, %v499_v18  ;;  %v730_v23 = vmul.f32 %v724_v17, %v500_v19  ;;  %v613_v24 = vmul.f32 %v607_v42, %v499_v18  ;;  %v614_v25 = vmul.f32 %v608_v43, %v500_v19 }
 0x124   : > { %v731_v27 = vadd.f32 %v729_v22, %v727_v20  ;;  %v732_v28 = vadd.f32 %v730_v23, %v728_v21  ;;  %v1836_v31 = vadd.f32 %v613_v24, %v611_v58  ;;  %v1838_v32 = vadd.f32 %v614_v25, %v612_v59 }
 0x126   : > { %vm733_vm6 = vcmp.ge.f32.partialorder %v731_v27, 0.0  ;;  %v735_v33 = vmul.f32 0.04, %v731_v27  ;;  %vm734_vm7 = vcmp.ge.f32.partialorder %v732_v28, 0.0  ;;  %v736_v34 = vmul.f32 0.04, %v732_v28 }
 0x128   : > { %v1840_v35 = vsel %vm733_vm6, %v731_v27, %v735_v33  ;;  %v1842_v29 = vsel %vm734_vm7, %v732_v28, %v736_v34  ;;  %vm1907_vm6 = vmpackc.low %vm1854_vm8, %vm1666_vm3 }
 0x129   : > { %v1524_v30 = vpack.i.bf16 %v1842_v29, %v1840_v35  ;;  %vm1914_vm7 = vmpackc.low %vm1858_vm10, %vm1666_vm3 }
 0x12b   : > { %1525 = vrot.lane.b32.xlu0 %v1524_v30, %s2121_s30  ;;  %1515 = vrot.lane.b32.xlu2 %v1524_v30, %s1658_s11  ;;  %s2148_s30 = smov 15  }
 0x12c   : > { %1505 = vrot.lane.b32.xlu1 %v1524_v30, %s1659_s12 }
 0x133   : > { %1520 = vrot.lane.b32.xlu2 %v1524_v30, %s2122_s18  ;;  %s437_s18 = scalar_lea.vmem %s2103_s4, %s1784_s20  ;;  %s2147_s20 = smov 127  }
 0x134   : > { %1510 = vrot.lane.b32.xlu1 %v1524_v30, %s1661_s21 }
 0x13b   : > { %1535 = vrot.lane.b32.xlu2 %v1524_v30, %s1662_s26 }
 0x13c   : > { %1530 = vrot.lane.b32.xlu1 %v1524_v30, %s1663_s28 }
 0x143   : > { %859 = vperm.xlu2 %1544, %v856_v47   ;;  %v931_v47 = vld.sshfl [vmem:[#allocation1] sm:$0xff pattern:$0x75316420] }
 0x144   : > { %1540 = vrot.lane.b32.xlu1 %v1524_v30, %s2120_s25  ;;  %1402 = vmatpush.msk.msrb.mxu2 %vm530_vm0, %v931_v47 }
 0x185   : > { %v1516_v39 = vpop.permute.xlu2 %1515 }
 0x186   : > { %v1518_v55 = vunpack.i.h.bf16 %v1516_v39  ;;  %v1517_v56 = vunpack.i.l.bf16 %v1516_v39 }
 0x188   : > { %v830_v6 = vsel %vm2111_vm14, %v1517_v56, %v1518_v55  ;;  %vm2116_vm14 = vcmask 7168  }
 0x18d   : > { %v1521_v57 = vpop.permute.xlu2 %1520 }
 0x18e   : > { %v1523_v63 = vunpack.i.h.bf16 %v1521_v57  ;;  %v1522_v0 = vunpack.i.l.bf16 %v1521_v57 }
 0x190   : > { %v811_v11 = vsel %vm2110_vm2, %v1523_v63, 0.0  ;;  %v808_v12 = vsel %vm2110_vm2, %v1522_v0, %v1523_v63  ;;  %vm2115_vm2 = vcmask 121856   ;;  %v903_v63 = vld [vmem:[%s437_s18 + $0x20] sm:$0xff]  ;;  %v904_v0 = vld [vmem:[%s437_s18 + $0x28] sm:$0xff] }
 0x191   : > { %v1379_v18 = vpack.c.bf16 %v808_v12, %v1840_v35  ;;  %v1393_v19 = vpack.c.bf16 %v811_v11, %v1842_v29 }
 0x195   : > { %v1536_v22 = vpop.permute.xlu2 %1535 }
 0x196   : > { %v1537_v34 = vunpack.i.l.bf16 %v1536_v22  ;;  %v1538_v35 = vunpack.i.h.bf16 %v1536_v22 }
 0x19d   : > { %v1526_v8 = vpop.permute.xlu0 %1525 }
 0x19e   : > { %v1506_v42 = vpop.permute.xlu1 %1505  ;;  %v1528_v14 = vunpack.i.h.bf16 %v1526_v8  ;;  %v1527_v15 = vunpack.i.l.bf16 %v1526_v8 }
 0x19f   : > { %v1508_v44 = vunpack.i.h.bf16 %v1506_v42  ;;  %v1507_v45 = vunpack.i.l.bf16 %v1506_v42 }
 0x1a0   : > { %v779_v23 = vsel %vm2115_vm2, 0.0, %v1527_v15  ;;  %v776_v25 = vsel %vm2115_vm2, %v1527_v15, %v1528_v14  ;;  %vm2119_vm2 = vcmask 138240  }
 0x1a1   : > { %v839_v49 = vsel %vm2114_vm9, %v1507_v45, %v1508_v44  ;;  %v842_v50 = vsel %vm2114_vm9, %v1508_v44, 0.0  ;;  %vm766_vm9 = vcmask 130048   ;;  %v749_v38 = vsel %vm2119_vm2, 0.0, %v1537_v34  ;;  %v855_v45 = vld [vmem:[%s2105_s6] sm:$0xf] }
 0x1a2   : > { %v843_v51 = vsel %vm1854_vm8, %v839_v49, 0.0  ;;  %v844_v52 = vsel %vm1858_vm10, %v842_v50, 0.0  ;;  %v746_v40 = vsel %vm2119_vm2, %v1537_v34, %v1538_v35  ;;  %vm2123_vm2 = vcmask 588800   ;;  %v899_v49 = vld [vmem:[%s437_s18] sm:$0xff]  ;;  %v900_v50 = vld [vmem:[%s437_s18 + $0x8] sm:$0xff] }
 0x1a3   : > { %v853_v53 = vpack.c.bf16 %v843_v51, %v843_v51  ;;  %v854_v54 = vpack.c.bf16 %v844_v52, %v844_v52  ;;  %1403 = vmatmul.msk.f32.vlgmr.msrb.gmra.mxu2 %vm511_vm1, %v899_v49  ;;  %1410 = vmatmul.msk.f32.vlgmr.msrb.gmra.mxu3 %vm511_vm1, %v899_v49  ;;  %v901_v51 = vld [vmem:[%s437_s18 + $0x10] sm:$0xff]  ;;  %v860_v52 = vpop.permute.xlu2 %859 }
 0x1a5   : > { %v868_v58 = vsel %vm2113_vm11, %v853_v53, 0  ;;  %v871_v59 = vsel %vm2113_vm11, %v854_v54, 0  ;;  %vm2118_vm11 = vmpackc.low %vm1877_vm15, %vm1858_vm10  ;;  %v902_v54 = vld [vmem:[%s437_s18 + $0x18] sm:$0xff]  ;;  %s2149_s18 = smov 16  }
 0x1a6   : > { %v1511_v61 = vpop.permute.xlu1 %1510  ;;  %876 = vmatpush.bf16.msrb.mxu0 %v868_v58  ;;  %889 = vmatpush.bf16.msrb.mxu1 %v871_v59 }
 0x1a7   : > { %v1513_v1 = vunpack.i.h.bf16 %v1511_v61  ;;  %v1512_v2 = vunpack.i.l.bf16 %v1511_v61 }
 0x1a9   : > { %v822_v4 = vsel %vm2112_vm13, %v1513_v1, 0.0  ;;  %v819_v5 = vsel %vm2112_vm13, %v1512_v2, %v1513_v1  ;;  %vm2117_vm13 = vmpackc.low %vm1873_vm12, %vm1854_vm8 }
 0x1aa   : > { %v1376_v9 = vpack.c.bf16 %v830_v6, %v819_v5  ;;  %v1390_v10 = vpack.c.bf16 %v1518_v55, %v822_v4 }
 0x1ab   : > { %1404 = vmatmul.msk.f32.gmra.mxu2 %vm511_vm1, %v900_v50  ;;  %1411 = vmatmul.msk.f32.gmra.mxu3 %vm511_vm1, %v900_v50 }
 0x1ac   : > { %1377 = vmatpush.bf16.msk.msrb.mxu0 %vm1884_vm4, %v1376_v9  ;;  %1391 = vmatpush.bf16.msk.msrb.mxu1 %vm1894_vm5, %v1390_v10 }
 0x1ae   : > { %v1531_v17 = vpop.permute.xlu1 %1530 }
 0x1af   : > { %v1533_v20 = vunpack.i.h.bf16 %v1531_v17  ;;  %v1532_v21 = vunpack.i.l.bf16 %v1531_v17 }
 0x1b0   : > { %1380 = vmatpush.bf16.msk.msrb.mxu0 %vm1907_vm6, %v1379_v18  ;;  %1394 = vmatpush.bf16.msk.msrb.mxu1 %vm1914_vm7, %v1393_v19 }
 0x1b1   : > { %v800_v24 = vsel %vm2116_vm14, 0.0, %v1532_v21  ;;  %v797_v27 = vsel %vm2116_vm14, %v1532_v21, %v1533_v20  ;;  %vm1947_vm14 = vmneg %vm766_vm9 }
 0x1b2   : > { %v1382_v28 = vpack.c.bf16 %v800_v24, %v779_v23  ;;  %v1396_v33 = vpack.c.bf16 %v797_v27, %v776_v25 }
 0x1b3   : > { %1405 = vmatmul.msk.f32.gmra.mxu2 %vm511_vm1, %v901_v51  ;;  %1412 = vmatmul.msk.f32.gmra.mxu3 %vm511_vm1, %v901_v51 }
 0x1b4   : > { %1383 = vmatpush.bf16.msk.msrb.mxu0 %vm2117_vm13, %v1382_v28  ;;  %1397 = vmatpush.bf16.msk.msrb.mxu1 %vm2118_vm11, %v1396_v33  ;;  %vm2124_vm13 = vmpackc.low %vm1947_vm14, %vm1873_vm12 }
 0x1b5   : > { %vm1961_vm11 = vmpackc.low %vm1666_vm3, %vm1877_vm15 }
 0x1b6   : > { %v1541_v30 = vpop.permute.xlu1 %1540 }
 0x1b7   : > { %v1543_v36 = vunpack.i.h.bf16 %v1541_v30  ;;  %v1542_v37 = vunpack.i.l.bf16 %v1541_v30 }
 0x1b9   : > { %v1386_v39 = vpack.c.bf16 %v1542_v37, %v749_v38  ;;  %v767_v41 = vsel %vm766_vm9, %v1542_v37, %v1543_v36 }
 0x1ba   : > { %v1399_v44 = vpack.c.bf16 %v767_v41, %v746_v40 }
 0x1bb   : > { %1387 = vmatpush.bf16.msk.msrb.mxu0 %vm2124_vm13, %v1386_v39  ;;  %1406 = vmatmul.msk.f32.gmra.mxu2 %vm511_vm1, %v902_v54 }
 0x1bc   : > { %1400 = vmatpush.bf16.msk.msrb.mxu1 %vm1961_vm11, %v1399_v44  ;;  %1413 = vmatmul.msk.f32.gmra.mxu3 %vm511_vm1, %v902_v54 }
 0x1be   : > { %1388 = vmatmul.msk.bf16.vlgmr.msrb.gmra.mxu0 %vm2123_vm2, %v855_v45 }
 0x1bf   : > { %1401 = vmatmul.msk.bf16.vlgmr.msrb.gmra.mxu1 %vm2123_vm2, %v855_v45 }
 0x1c3   : > { %1407 = vmatmul.msk.f32.gmra.mxu2 %vm511_vm1, %v903_v63 }
 0x1c4   : > { %1414 = vmatmul.msk.f32.gmra.mxu3 %vm511_vm1, %v903_v63 }
 0x1cb   : > { %1408 = vmatmul.msk.f32.gmra.mxu2 %vm511_vm1, %v904_v0 }
 0x1cc   : > { %1415 = vmatmul.msk.f32.gmra.mxu3 %vm511_vm1, %v904_v0 }
 0x226   : > { %v972_v10 = vpop.f32.mrf.mxu2  ;;  %v1007_v11 = vpop.f32.mrf.mxu3 }
 0x22e   : > { %v975_v12 = vpop.f32.mrf.mxu2  ;;  %v1010_v14 = vpop.f32.mrf.mxu3 }
 0x236   : > { %v978_v15 = vpop.f32.mrf.mxu2  ;;  %v1013_v17 = vpop.f32.mrf.mxu3 }
 0x237   : > { %v1025_v36 = vmul.f32 %v978_v15, %v972_v10  ;;  %v1026_v37 = vmul.f32 %v1013_v17, %v1007_v11 }
 0x239   : > { %v1027_v41 = vadd.f32 %v1025_v36, %v975_v12  ;;  %v1028_v44 = vadd.f32 %v1026_v37, %v1010_v14 }
 0x23b   : > { %v882_v53 = vpop.f32.mrf.mxu0 }
 0x23c   : > { %v883_v55 = vadd.f32 %v882_v53, %v860_v52  ;;  %v895_v56 = vpop.f32.mrf.mxu1 }
 0x23d   : > { %v896_v57 = vadd.f32 %v895_v56, %v860_v52 }
 0x23e   : > { %v981_v18 = vpop.f32.mrf.mxu2 }
 0x23f   : > { %v905_v58 = vadd.f32 %v896_v57, %v883_v55  ;;  %v1016_v19 = vpop.f32.mrf.mxu3 }
 0x241   : > { %906 = vadd.xlane.f32.xlu1 %v905_v58 }
 0x243   : > { %v884_v59 = vpop.f32.mrf.mxu0 }
 0x244   : > { %v897_v61 = vpop.f32.mrf.mxu1 }
 0x246   : > { %v984_v23 = vpop.f32.mrf.mxu2 }
 0x247   : > { %v1019_v24 = vpop.f32.mrf.mxu3 }
 0x24e   : > { %v987_v35 = vpop.f32.mrf.mxu2 }
 0x24f   : > { %v1022_v30 = vpop.f32.mrf.mxu3  ;;  %v1029_v39 = vmul.f32 %v987_v35, %v981_v18 }
 0x250   : > { %v1030_v40 = vmul.f32 %v1022_v30, %v1016_v19  ;;  %v1132_v30 = vld [vmem:[%s2108_s9] sm:$0xff] }
 0x251   : > { %v1031_v48 = vadd.f32 %v1029_v39, %v984_v23 }
 0x252   : > { %v1032_v50 = vadd.f32 %v1030_v40, %v1019_v24 }
 0x2b4   : > { %v907_v1 = vpop.xlane.xlu1 %906 }
 0x2b5   : > { %v908_v2 = vmul.f32 %v907_v1, %v1830_v26 }
 0x2b7   : > { %v909_v4 = vsub.f32 %v883_v55, %v908_v2  ;;  %v910_v5 = vsub.f32 %v896_v57, %v908_v2 }
 0x2b9   : > { %v911_v6 = vmul.f32 %v909_v4, %v909_v4  ;;  %v912_v8 = vmul.f32 %v910_v5, %v910_v5 }
 0x2bb   : > { %v913_v9 = vadd.f32 %v912_v8, %v911_v6 }
 0x2bd   : > { %914 = vadd.xlane.f32.xlu2 %v913_v9 }
 0x330   : > { %v915_v20 = vpop.xlane.xlu2 %914 }
 0x331   : > { %v916_v21 = vmul.f32 %v915_v20, %v1830_v26 }
 0x333   : > { %v917_v22 = vadd.f32 1e-05, %v916_v21 }
 0x335   : > { %1590 = vrsqrt.f32 %v917_v22  ;;  %vm924_vm1 = vweird.f32 %v917_v22 }
 0x33b   : > { %v1591_v25 = vpop.eup %1590 }
 0x33c   : > { %v919_v27 = vmul.f32 %v1591_v25, %v917_v22  ;;  %vm925_vm0 = vweird.f32 %v1591_v25 }
 0x33d   : > { %vm926_vm3 = vmor %vm924_vm1, %vm925_vm0  ;;  %vm2152_vm0 = vcmask 1043456  }
 0x33e   : > { %v920_v28 = vmul.f32 %v1591_v25, %v919_v27  ;;  %vm2153_vm1 = vmmov %vm2152_vm0 }
 0x340   : > { %v921_v33 = vmul.f32 0.5, %v920_v28 }
 0x342   : > { %v922_v34 = vsub.f32 1.5, %v921_v33 }
 0x344   : > { %v923_v38 = vmul.f32 %v1591_v25, %v922_v34 }
 0x346   : > { %v927_v26 = vsel %vm926_vm3, %v1591_v25, %v923_v38  ;;  %vm2154_vm3 = vcmask 924672  }
 0x347   : > { %v928_v45 = vmul.f32 %v927_v26, %v909_v4  ;;  %v929_v47 = vmul.f32 %v927_v26, %v910_v5 }
 0x349   : > { %v1033_v49 = vmul.f32 %v1027_v41, %v928_v45  ;;  %v1034_v51 = vmul.f32 %v1028_v44, %v929_v47 }
 0x34b   : > { %v1035_v52 = vadd.f32 %v1033_v49, %v1031_v48  ;;  %v1036_v53 = vadd.f32 %v1034_v51, %v1032_v50  ;;  %v618_v49 = vpack.c.bf16 %v1836_v31, %v1836_v31 }
 0x34d   : > { %vm1037_vm2 = vcmp.ge.f32.partialorder %v1035_v52, 0.0  ;;  %v1039_v54 = vmul.f32 0.04, %v1035_v52  ;;  %vm1038_vm13 = vcmp.ge.f32.partialorder %v1036_v53, 0.0  ;;  %v1040_v55 = vmul.f32 0.04, %v1036_v53 }
 0x34f   : > { %v1041_v56 = vsel %vm1037_vm2, %v1035_v52, %v1039_v54  ;;  %v1042_v57 = vsel %vm1038_vm13, %v1036_v53, %v1040_v55  ;;  %vm2150_vm13 = vcmask 908288   ;;  %v619_v52 = vpack.c.bf16 %v1838_v32, %v1838_v32  ;;  %v1131_v32 = vld [vmem:[%s2107_s8] sm:$0xf] }
 0x350   : > { %v1575_v58 = vpack.i.bf16 %v1042_v57, %v1041_v56  ;;  %vm2151_vm2 = vmmov %vm2150_vm13 }
 0x352   : > { %1576 = vrot.lane.b32.xlu1 %v1575_v58, %s1662_s26  ;;  %1571 = vrot.lane.b32.xlu2 %v1575_v58, %s1663_s28 }
 0x353   : > { %1546 = vrot.lane.b32.xlu0 %v1575_v58, %s1659_s12 }
 0x35b   : > { %1551 = vrot.lane.b32.xlu0 %v1575_v58, %s1661_s21 }
 0x363   : > { %1556 = vrot.lane.b32.xlu0 %v1575_v58, %s1658_s11  ;;  %s1223_s11 = scalar_lea.hbm %s2109_s10, %s1452_s29 }
 0x364   : > { %s1227_s26 = sshll.u32 %s1223_s11, 4  ;;  %s1228_s26 = int_to_ptr.hbm [resolvable:$true] %s1227_s26 }
 0x365   : > { %s1606_s28 = sshra.s32 %s1228_s26, 4  ;;  %s1607_s28 = int_to_ptr.hbm [resolvable:$true] %s1606_s28 }
 0x366   : > { %s1608_s25 = scalar_lea.hbm %s1607_s28, 16  ;;  %p1613_p0 = scmp.lt.s32.totalorder %s1607_s28, %s2109_s10 }
 0x367   : > { %p1609_p11 = scmp.ne.s32.totalorder %s1607_s28, %s1608_s25 }
 0x369   : > { %p1610_p12 = pnand %p1609_p11, %p1760_p5 }
 0x36b   : > { %1561 = vrot.lane.b32.xlu0 %v1575_v58, %s2147_s20  ;;  %s1339_s20 = sshll.u32 %s410_s27, 4  ;;  %p1611_p13 = pneg %p1610_p12 }
 0x36c   : > { %s412_s12 = scalar_lea.vmem [#allocation2], %s1339_s20 }
 0x36d   : > { %s1225_s21 = sshll.u32 %s412_s12, 4  ;;  %s1226_s21 = int_to_ptr.vmem [resolvable:$true] %s1225_s21 }
 0x373   : > { %1566 = vrot.lane.b32.xlu0 %v1575_v58, %s2148_s30  ;;  %s1612_s30 = scalar_lea.hbm %s2109_s10, 32 }
 0x374   : > { %p1614_p1 = scmp.lt.s32.totalorder %s1612_s30, %s1608_s25 }
 0x376   : > { %p1615_p2 = por %p1614_p1, %p1613_p0 }
 0x378   : > { %p1616_p3 = pnand %p1615_p2, %p1611_p13 }
 0x37b   : > { %1581 = vrot.lane.b32.xlu0 %v1575_v58, %s2149_s18 }
 0x383   : > { %1135 = vperm.xlu0 %1585, %v1132_v30  }
 0x3ac   : > { %v1572_v33 = vpop.permute.xlu2 %1571 }
 0x3ad   : > { %v1574_v3 = vunpack.i.h.bf16 %v1572_v33  ;;  %v1573_v7 = vunpack.i.l.bf16 %v1572_v33 }
 0x3c4   : > { %v1577_v26 = vpop.permute.xlu1 %1576 }
 0x3c5   : > { %v1547_v59 = vpop.permute.xlu0 %1546  ;;  %v1578_v47 = vunpack.i.l.bf16 %v1577_v26  ;;  %v1579_v16 = vunpack.i.h.bf16 %v1577_v26 }
 0x3c6   : > { %v1549_v61 = vunpack.i.h.bf16 %v1547_v59  ;;  %v1548_v63 = vunpack.i.l.bf16 %v1547_v59 }
 0x3c8   : > { %v1118_v0 = vsel %vm2150_vm13, %v1549_v61, 0.0  ;;  %v1115_v1 = vsel %vm2151_vm2, %v1548_v63, %v1549_v61  ;;  %vm2155_vm13 = vmmov %vm2154_vm3  ;;  %vm2156_vm2 = vcmask 916480  }
 0x3c9   : > { %v1120_v2 = vsel %vm1858_vm10, %v1118_v0, 0.0  ;;  %v1119_v4 = vsel %vm1854_vm8, %v1115_v1, 0.0 }
 0x3ca   : > { %v1130_v5 = vpack.c.bf16 %v1120_v2, %v1120_v2  ;;  %v1129_v6 = vpack.c.bf16 %v1119_v4, %v1119_v4 }
 0x3cc   : > { %v1142_v8 = vsel %vm2152_vm0, %v1129_v6, 0  ;;  %v1145_v9 = vsel %vm2153_vm1, %v1130_v5, 0  ;;  %vm2157_vm0 = vcmask 1039360  }
 0x3cd   : > { %v1552_v10 = vpop.permute.xlu0 %1551  ;;  %1150 = vmatpush.bf16.msra.mxu0 %v1142_v8  ;;  %1163 = vmatpush.bf16.msra.mxu1 %v1145_v9  ;;  %vm2158_vm1 = vmmov %vm2157_vm0 }
 0x3ce   : > { %v1554_v11 = vunpack.i.h.bf16 %v1552_v10  ;;  %v1553_v12 = vunpack.i.l.bf16 %v1552_v10 }
 0x3d0   : > { %v1100_v18 = vsel %vm2154_vm3, %v1554_v11, 0.0  ;;  %v1097_v19 = vsel %vm2155_vm13, %v1553_v12, %v1554_v11  ;;  %vm2161_vm3 = vcmask 121856  }
 0x3d1   : > { %vm2162_vm13 = vmmov %vm2161_vm3 }
 0x3d5   : > { %v1557_v14 = vpop.permute.xlu0 %1556 }
 0x3d6   : > { %v1559_v15 = vunpack.i.h.bf16 %v1557_v14  ;;  %v1558_v17 = vunpack.i.l.bf16 %v1557_v14 }
 0x3d8   : > { %v1107_v20 = vsel %vm2156_vm2, %v1558_v17, %v1559_v15  ;;  %v1431_v21 = vpack.c.bf16 %v1559_v15, %v1100_v18  ;;  %vm2165_vm2 = vcmask 138240  }
 0x3d9   : > { %v1417_v22 = vpack.c.bf16 %v1107_v20, %v1097_v19  ;;  %v1052_v43 = vsel %vm2165_vm2, 0.0, %v1578_v47 }
 0x3da   : > { %1432 = vmatpush.bf16.msk.msra.mxu1 %vm1894_vm5, %v1431_v21 }
 0x3db   : > { %1418 = vmatpush.bf16.msk.msra.mxu0 %vm1884_vm4, %v1417_v22  ;;  %vm2159_vm4 = vcmask 7168  }
 0x3dc   : > { %v1077_v39 = vsel %vm2159_vm4, %v1573_v7, %v1574_v3  ;;  %vm2160_vm5 = vmmov %vm2159_vm4 }
 0x3dd   : > { %v1562_v23 = vpop.permute.xlu0 %1561  ;;  %v1080_v40 = vsel %vm2160_vm5, 0.0, %v1573_v7 }
 0x3de   : > { %v1564_v24 = vunpack.i.h.bf16 %v1562_v23  ;;  %v1563_v25 = vunpack.i.l.bf16 %v1562_v23 }
 0x3e0   : > { %v1090_v27 = vsel %vm2157_vm0, %v1564_v24, 0.0  ;;  %v1087_v28 = vsel %vm2158_vm1, %v1563_v25, %v1564_v24  ;;  %vm2170_vm0 = vcmask 588800  }
 0x3e1   : > { %v1434_v34 = vpack.c.bf16 %v1090_v27, %v1042_v57  ;;  %v1420_v35 = vpack.c.bf16 %v1087_v28, %v1041_v56  ;;  %vm2171_vm1 = vmmov %vm2170_vm0 }
 0x3e3   : > { %1421 = vmatpush.bf16.msk.msra.mxu0 %vm1907_vm6, %v1420_v35  ;;  %1435 = vmatpush.bf16.msk.msra.mxu1 %vm1914_vm7, %v1434_v34  ;;  %vm2163_vm6 = vmpackc.low %vm1873_vm12, %vm1854_vm8 }
 0x3e4   : > { %vm2164_vm7 = vmpackc.low %vm1877_vm15, %vm1858_vm10  ;;  %vm2168_vm15 = vcmask 1043456  }
 0x3e5   : > { %v1567_v36 = vpop.permute.xlu0 %1566  ;;  %vm2166_vm8 = vmmov %vm2165_vm2  ;;  %v1178_v31 = vsel %vm2168_vm15, %v618_v49, 0 }
 0x3e6   : > { %v1569_v37 = vunpack.i.h.bf16 %v1567_v36  ;;  %v1568_v38 = vunpack.i.l.bf16 %v1567_v36  ;;  %v1049_v53 = vsel %vm2166_vm8, %v1578_v47, %v1579_v16  ;;  %vm2167_vm10 = vmpackc.low %vm1947_vm14, %vm1873_vm12  ;;  %vm1173_vm12 = vcmask 64512  }
 0x3e8   : > { %v1067_v41 = vsel %vm2161_vm3, %v1568_v38, %v1569_v37  ;;  %v1070_v44 = vsel %vm2162_vm13, 0.0, %v1568_v38 }
 0x3e9   : > { %v1423_v45 = vpack.c.bf16 %v1080_v40, %v1070_v44  ;;  %v1437_v13 = vpack.c.bf16 %v1077_v39, %v1067_v41 }
 0x3eb   : > { %1424 = vmatpush.bf16.msk.msra.mxu0 %vm2163_vm6, %v1423_v45  ;;  %1438 = vmatpush.bf16.msk.msra.mxu1 %vm2164_vm7, %v1437_v13 }
 0x3ed   : > { %v1582_v48 = vpop.permute.xlu0 %1581 }
 0x3ee   : > { %v1584_v50 = vunpack.i.h.bf16 %v1582_v48  ;;  %v1583_v51 = vunpack.i.l.bf16 %v1582_v48 }
 0x3f0   : > { %v1059_v62 = vsel %vm766_vm9, %v1583_v51, %v1584_v50  ;;  %v1427_v54 = vpack.c.bf16 %v1583_v51, %v1052_v43  ;;  %vm2169_vm9 = vmmov %vm2168_vm15 }
 0x3f1   : > { %v1440_v46 = vpack.c.bf16 %v1059_v62, %v1049_v53  ;;  %v1181_v55 = vsel %vm2169_vm9, %v619_v52, 0 }
 0x3f2   : > { %1428 = vmatpush.bf16.msk.msra.mxu0 %vm2167_vm10, %v1427_v54 }
 0x3f3   : > { %1441 = vmatpush.bf16.msk.msra.mxu1 %vm1961_vm11, %v1440_v46 }
 0x3f5   : > { %1429 = vmatmul.msk.bf16.vlgmr.msra.gmra.mxu0 %vm2170_vm0, %v1131_v32  ;;  %v1136_v58 = vpop.permute.xlu0 %1135 }
 0x3f6   : > { %1190 = vmatpush.bf16.msrb.mxu0 %v1178_v31  ;;  %1442 = vmatmul.msk.bf16.vlgmr.msra.gmra.mxu1 %vm2171_vm1, %v1131_v32 }
 0x3f7   : > { %1203 = vmatpush.bf16.msrb.mxu1 %v1181_v55 }
 0x405   : > { %1443 = vmatmul.msk.bf16.vlgmr.msrb.gmra.mxu0 %vm1173_vm12, %v617_v60 }
 0x406   : > { %1444 = vmatmul.msk.bf16.vlgmr.msrb.gmra.mxu1 %vm1173_vm12, %v617_v60 }
 0x472   : > { %v1156_v29 = vpop.f32.mrf.mxu0 }
 0x473   : > { %v1169_v56 = vpop.f32.mrf.mxu1  ;;  %v1157_v59 = vadd.f32 %v1156_v29, %v1136_v58 }
 0x474   : > { %v1170_v61 = vadd.f32 %v1169_v56, %v1136_v58 }
 0x47a   : > { %v1158_v42 = vpop.f32.mrf.mxu0 }
 0x47b   : > { %v1171_v57 = vpop.f32.mrf.mxu1 }
 0x482   : > { %v1192_v63 = vpop.f32.mrf.mxu0 }
 0x483   : > { %v1193_v0 = vadd.f32 %v1192_v63, %v1157_v59  ;;  %v1205_v1 = vpop.f32.mrf.mxu1 }
 0x484   : > { %v1206_v2 = vadd.f32 %v1205_v1, %v1170_v61 }
 0x485   : > { %1209 = vst [vmem:[%s412_s12] sm:$0xff] %v1193_v0 }
 0x486   : > { %1210 = vst [vmem:[%s412_s12 + $0x8] sm:$0xff] %v1206_v2 }
 0x487   : > { %1619 = shalt.err (!%p1616_p3)
}
 0x488   : > { %1454 = dma.vmem_to_hbm [thread:$0]  (%p1760_p5), %s1226_s21, 256, %s1228_s26, %s1212_s17  }
 0x48a   : > { %v1194_v4 = vpop.f32.mrf.mxu0 }
 0x48b   : > { %v1207_v5 = vpop.f32.mrf.mxu1 }
 0x48c PF: > { %p1460_p4 = scmp.ge.s32.totalorder %s1654_s16, 2  ;;  %s1239_s27 = sand.u32 1, %s1642_s13  }
 0x48d   : > { %s1240_s12 = scalar_lea.sflag [#allocation3], %s1239_s27 }
 0x48e   : > { %p1457_p7 = pnand %p1460_p4, %p1764_p6 }
 0x490   : > { %p1458_p8 = pneg %p1457_p7 }
 0x492   : > { %1637 = dma.done.wait (%p1458_p8), %s1240_s12, 256  }
 0x493   : > { %1639 = vsyncadd (%p1458_p8), %s1240_s12, 4294967040  ;;  %p20_p5 = scmp.ge.s32.totalorder %s1747_s19, 4   ;;  %s2172_s13 = smov %s1646_s14 }
 0x494   : > { %s2173_s14 = smov %s1650_s15  ;;  %s2174_s15 = smov %s1758_s22 }
 0x495   : > { %s2175_s16 = smov %s1747_s19  ;;  %22 = sbr.rel (!%p20_p5) target bundleno = 3 (0x3), region = 107 }
 0x49a   :  { %1246 = vsyncpa [#allocation3], 1 }
 0x49b   :  { %1248 = vsyncpa [#allocation3 + $0x1], 1 }

</bundles_post_ra>
